<compile_context>
chip_gen: v7x
topology: tpu7x:2x2x1
jax: 0.10.0
libtpu: 0.0.40
codegen_flags: <defaults>
</compile_context>

<pallas_src>
import functools

import jax
import jax.numpy as jnp
from jax.experimental import pallas as pl
from jax.experimental.pallas import tpu as pltpu

BN_EPS = 1e-5


def _decoder_kernel(alphas_ref, fB_ref, fD_ref, f2_ref, f1_ref, masks_ref,
                    w1_ref, sh1_ref, w2_ref, sh2_ref, w3_ref, sh3_ref,
                    o_ref, *, h, w):
    """Fused Decoder forward for ONE batch element (channel-major, HW in lanes)."""
    hw = h * w
    # Boundary masks for the 9 taps, loaded once: each is [1, HW] of 0/1.
    masks = [masks_ref[k] for k in range(9)]

    def taps_of(x):
        # x: [Cin, HW]  ->  [9*Cin, HW]; tap order k = (dy+1)*3 + (dx+1) (matches weights).
        pieces = []
        k = 0
        for dy in (-1, 0, 1):
            for dx in (-1, 0, 1):
                s = dy * w + dx
                r = x if s == 0 else pltpu.roll(x, shift=(-s) % hw, axis=1)
                pieces.append(r * masks[k])
                k += 1
        return jnp.concatenate(pieces, axis=0)

    def conv_bn(x, w_ref, sh_ref):
        # [Cout, 9*Cin] @ [9*Cin, HW]  + per-channel shift [Cout, 1]
        return jnp.dot(w_ref[...], taps_of(x),
                       preferred_element_type=jnp.float32) + sh_ref[...]

    a1 = alphas_ref[0]
    a2 = alphas_ref[1]

    x0 = jnp.concatenate([fB_ref[0], fD_ref[0]], axis=0)      # cat([featB, featD], C)
    y1 = conv_bn(x0, w1_ref, sh1_ref)                          # [16, HW]
    y1 = jnp.where(y1 >= 0.0, y1, y1 * a1)                     # PReLU (scalar alpha)

    x1 = jnp.concatenate([y1, f2_ref[0]], axis=0)              # cat([out, feat2], C)
    y2 = conv_bn(x1, w2_ref, sh2_ref)
    y2 = jnp.where(y2 >= 0.0, y2, y2 * a2)

    x2 = jnp.concatenate([y2, f1_ref[0]], axis=0)              # cat([out, feat1], C)
    y3 = conv_bn(x2, w3_ref, sh3_ref)                          # [3, HW]
    o_ref[0] = jax.nn.sigmoid(y3).astype(o_ref.dtype)


def _prep_block_params(p):
    """Fold conv bias + BN (running stats) into weights/shift, reshape to [Cout, 9*Cin]."""
    cout, cin = p["w"].shape[0], p["w"].shape[1]
    s = p["gamma"] / jnp.sqrt(p["var"] + BN_EPS)
    w2 = jnp.transpose(p["w"], (0, 2, 3, 1)).reshape(cout, 9 * cin)   # (ky,kx,ci) flat
    w2 = (w2 * s[:, None]).astype(jnp.float32)
    shift = (p["beta"] + (p["b"] - p["mean"]) * s).reshape(cout, 1).astype(jnp.float32)
    return w2, shift


def _boundary_masks(h, w):
    """[9, 1, H*W] 0/1 masks marking in-bounds taps for padding=1, tap order matches kernel."""
    yy, xx = jnp.meshgrid(jnp.arange(h), jnp.arange(w), indexing="ij")
    yy = yy.reshape(-1)
    xx = xx.reshape(-1)
    ms = []
    for dy in (-1, 0, 1):
        for dx in (-1, 0, 1):
            valid = ((yy + dy >= 0) & (yy + dy < h) &
                     (xx + dx >= 0) & (xx + dx < w))
            ms.append(valid.astype(jnp.float32))
    return jnp.stack(ms, axis=0).reshape(9, 1, h * w)


@jax.jit
def decoder_forward(feat1, feat2, featB, featD, params):
    n, c, h, w = feat1.shape
    hw = h * w
    w1, sh1 = _prep_block_params(params["conv1"])
    w2, sh2 = _prep_block_params(params["conv2"])
    w3, sh3 = _prep_block_params(params["conv3"])
    cout = w3.shape[0]
    masks = _boundary_masks(h, w)
    alphas = jnp.stack([params["alpha1"], params["alpha2"]]).astype(jnp.float32)

    flat = lambda t: t.reshape(n, c, hw)   # NCHW is already channel-major; reshape is free
    fB, fD, f2, f1 = flat(featB), flat(featD), flat(feat2), flat(feat1)

    kern = functools.partial(_decoder_kernel, h=h, w=w)
    feat_spec = pl.BlockSpec((1, c, hw), lambda i: (i, 0, 0))
    full = lambda a: pl.BlockSpec(a.shape, lambda i, _nd=a.ndim: (0,) * _nd)

    out = pl.pallas_call(
        kern,
        out_shape=jax.ShapeDtypeStruct((n, cout, hw), jnp.float32),
        grid=(n,),
        in_specs=[
            pl.BlockSpec(memory_space=pltpu.MemorySpace.SMEM),   # alphas (2,)
            feat_spec, feat_spec, feat_spec, feat_spec,          # featB, featD, feat2, feat1
            full(masks),
            full(w1), full(sh1), full(w2), full(sh2), full(w3), full(sh3),
        ],
        out_specs=pl.BlockSpec((1, cout, hw), lambda i: (i, 0, 0)),
        compiler_params=pltpu.CompilerParams(dimension_semantics=("parallel",)),
    )(alphas, fB, fD, f2, f1, masks, w1, sh1, w2, sh2, w3, sh3)
    return out.reshape(n, cout, h, w)   # already NCHW, like PyTorch


def init_conv_block_params(key, cin, cout):
    ks = jax.random.split(key, 6)
    return dict(
        w=0.1 * jax.random.normal(ks[0], (cout, cin, 3, 3), jnp.float32),
        b=0.1 * jax.random.normal(ks[1], (cout,), jnp.float32),
        gamma=1.0 + 0.1 * jax.random.normal(ks[2], (cout,), jnp.float32),
        beta=0.1 * jax.random.normal(ks[3], (cout,), jnp.float32),
        mean=0.1 * jax.random.normal(ks[4], (cout,), jnp.float32),
        var=0.9 + 0.1 * jax.random.uniform(ks[5], (cout,), jnp.float32),
    )


def init_decoder_params(key):
    k1, k2, k3 = jax.random.split(key, 3)
    return dict(
        conv1=init_conv_block_params(k1, 32, 16),
        conv2=init_conv_block_params(k2, 32, 16),
        conv3=init_conv_block_params(k3, 32, 3),
        alpha1=jnp.float32(0.25),  # nn.PReLU() default (single shared alpha)
        alpha2=jnp.float32(0.25),
    )


# --- pure-JAX reference (sanity check only) ---
def _ref_conv_block(x_nhwc, p, alpha, act):
    w_hwio = jnp.transpose(p["w"], (2, 3, 1, 0))
    y = jax.lax.conv_general_dilated(
        x_nhwc, w_hwio, window_strides=(1, 1), padding=((1, 1), (1, 1)),
        dimension_numbers=("NHWC", "HWIO", "NHWC"),
        precision=jax.lax.Precision.HIGHEST) + p["b"]
    y = (y - p["mean"]) / jnp.sqrt(p["var"] + BN_EPS) * p["gamma"] + p["beta"]
    if act == "prelu":
        return jnp.where(y >= 0.0, y, alpha * y)
    return jax.nn.sigmoid(y)


def decoder_ref(feat1, feat2, featB, featD, params):
    to_nhwc = lambda t: jnp.transpose(t, (0, 2, 3, 1))
    f1, f2, fB, fD = map(to_nhwc, (feat1, feat2, featB, featD))
    out = _ref_conv_block(jnp.concatenate([fB, fD], -1), params["conv1"],
                          params["alpha1"], "prelu")
    out = _ref_conv_block(jnp.concatenate([out, f2], -1), params["conv2"],
                          params["alpha2"], "prelu")
    out = _ref_conv_block(jnp.concatenate([out, f1], -1), params["conv3"],
                          0.0, "sigmoid")
    return jnp.transpose(out, (0, 3, 1, 2))


if __name__ == "__main__":
    key = jax.random.PRNGKey(0)
    k_in = jax.random.split(key, 5)
    N, C, H, W = 2, 16, 16, 16  # feat1/feat2/featB/featD each have 16 channels
    feat1 = jax.random.normal(k_in[0], (N, C, H, W), jnp.float32)
    feat2 = jax.random.normal(k_in[1], (N, C, H, W), jnp.float32)
    featB = jax.random.normal(k_in[2], (N, C, H, W), jnp.float32)
    featD = jax.random.normal(k_in[3], (N, C, H, W), jnp.float32)
    params = init_decoder_params(k_in[4])

    out = decoder_forward(feat1, feat2, featB, featD, params)
    out = jax.block_until_ready(out)
    assert out.shape == (N, 3, H, W), out.shape

    ref = decoder_ref(feat1, feat2, featB, featD, params)
    max_err = float(jnp.max(jnp.abs(out - ref)))
    assert max_err < 5e-2, f"max abs error {max_err}"
    print("KERNEL_OK")
</pallas_src>

<mosaic_0001>
module attributes {stable_mosaic.version = 11 : i64} {
  func.func @_decoder_kernel(%arg0: i32, %arg1: memref<2xf32, #tpu.memory_space<smem>>, %arg2: memref<1x16x256xf32, #tpu.memory_space<vmem>>, %arg3: memref<1x16x256xf32, #tpu.memory_space<vmem>>, %arg4: memref<1x16x256xf32, #tpu.memory_space<vmem>>, %arg5: memref<1x16x256xf32, #tpu.memory_space<vmem>>, %arg6: memref<9x1x256xf32, #tpu.memory_space<vmem>>, %arg7: memref<16x288xf32, #tpu.memory_space<vmem>>, %arg8: memref<16x1xf32, #tpu.memory_space<vmem>>, %arg9: memref<16x288xf32, #tpu.memory_space<vmem>>, %arg10: memref<16x1xf32, #tpu.memory_space<vmem>>, %arg11: memref<3x288xf32, #tpu.memory_space<vmem>>, %arg12: memref<3x1xf32, #tpu.memory_space<vmem>>, %arg13: memref<1x3x256xf32, #tpu.memory_space<vmem>>) attributes {dimension_semantics = [#tpu.dimension_semantics<parallel>], iteration_bounds = array<i64: 2>, scalar_prefetch = 0 : i64, scratch_operands = 0 : i64, tpu.core_type = #tpu.core_type<tc>, window_params = [{transform_indices = @transform_0, window_bounds = array<i64: 2>}, {transform_indices = @transform_1, window_bounds = array<i64: 1, 16, 256>}, {transform_indices = @transform_2, window_bounds = array<i64: 1, 16, 256>}, {transform_indices = @transform_3, window_bounds = array<i64: 1, 16, 256>}, {transform_indices = @transform_4, window_bounds = array<i64: 1, 16, 256>}, {pipeline_mode = #tpu.pipeline_mode<synchronous>, transform_indices = @transform_5, window_bounds = array<i64: 9, 1, 256>}, {pipeline_mode = #tpu.pipeline_mode<synchronous>, transform_indices = @transform_6, window_bounds = array<i64: 16, 288>}, {pipeline_mode = #tpu.pipeline_mode<synchronous>, transform_indices = @transform_7, window_bounds = array<i64: 16, 1>}, {pipeline_mode = #tpu.pipeline_mode<synchronous>, transform_indices = @transform_8, window_bounds = array<i64: 16, 288>}, {pipeline_mode = #tpu.pipeline_mode<synchronous>, transform_indices = @transform_9, window_bounds = array<i64: 16, 1>}, {pipeline_mode = #tpu.pipeline_mode<synchronous>, transform_indices = @transform_10, window_bounds = array<i64: 3, 288>}, {pipeline_mode = #tpu.pipeline_mode<synchronous>, transform_indices = @transform_11, window_bounds = array<i64: 3, 1>}, {transform_indices = @transform_12, window_bounds = array<i64: 1, 3, 256>}]} {
    %c0 = arith.constant 0 : index
    %c0_0 = arith.constant 0 : index
    %c0_1 = arith.constant 0 : index
    %0 = vector.load %arg6[%c0, %c0_0, %c0_1] : memref<9x1x256xf32, #tpu.memory_space<vmem>>, vector<1x1x256xf32>
    %1 = vector.shape_cast %0 : vector<1x1x256xf32> to vector<1x256xf32>
    %c1 = arith.constant 1 : index
    %c0_2 = arith.constant 0 : index
    %c0_3 = arith.constant 0 : index
    %2 = vector.load %arg6[%c1, %c0_2, %c0_3] : memref<9x1x256xf32, #tpu.memory_space<vmem>>, vector<1x1x256xf32>
    %3 = vector.shape_cast %2 : vector<1x1x256xf32> to vector<1x256xf32>
    %c2 = arith.constant 2 : index
    %c0_4 = arith.constant 0 : index
    %c0_5 = arith.constant 0 : index
    %4 = vector.load %arg6[%c2, %c0_4, %c0_5] : memref<9x1x256xf32, #tpu.memory_space<vmem>>, vector<1x1x256xf32>
    %5 = vector.shape_cast %4 : vector<1x1x256xf32> to vector<1x256xf32>
    %c3 = arith.constant 3 : index
    %c0_6 = arith.constant 0 : index
    %c0_7 = arith.constant 0 : index
    %6 = vector.load %arg6[%c3, %c0_6, %c0_7] : memref<9x1x256xf32, #tpu.memory_space<vmem>>, vector<1x1x256xf32>
    %7 = vector.shape_cast %6 : vector<1x1x256xf32> to vector<1x256xf32>
    %c4 = arith.constant 4 : index
    %c0_8 = arith.constant 0 : index
    %c0_9 = arith.constant 0 : index
    %8 = vector.load %arg6[%c4, %c0_8, %c0_9] : memref<9x1x256xf32, #tpu.memory_space<vmem>>, vector<1x1x256xf32>
    %9 = vector.shape_cast %8 : vector<1x1x256xf32> to vector<1x256xf32>
    %c5 = arith.constant 5 : index
    %c0_10 = arith.constant 0 : index
    %c0_11 = arith.constant 0 : index
    %10 = vector.load %arg6[%c5, %c0_10, %c0_11] : memref<9x1x256xf32, #tpu.memory_space<vmem>>, vector<1x1x256xf32>
    %11 = vector.shape_cast %10 : vector<1x1x256xf32> to vector<1x256xf32>
    %c6 = arith.constant 6 : index
    %c0_12 = arith.constant 0 : index
    %c0_13 = arith.constant 0 : index
    %12 = vector.load %arg6[%c6, %c0_12, %c0_13] : memref<9x1x256xf32, #tpu.memory_space<vmem>>, vector<1x1x256xf32>
    %13 = vector.shape_cast %12 : vector<1x1x256xf32> to vector<1x256xf32>
    %c7 = arith.constant 7 : index
    %c0_14 = arith.constant 0 : index
    %c0_15 = arith.constant 0 : index
    %14 = vector.load %arg6[%c7, %c0_14, %c0_15] : memref<9x1x256xf32, #tpu.memory_space<vmem>>, vector<1x1x256xf32>
    %15 = vector.shape_cast %14 : vector<1x1x256xf32> to vector<1x256xf32>
    %c8 = arith.constant 8 : index
    %c0_16 = arith.constant 0 : index
    %c0_17 = arith.constant 0 : index
    %16 = vector.load %arg6[%c8, %c0_16, %c0_17] : memref<9x1x256xf32, #tpu.memory_space<vmem>>, vector<1x1x256xf32>
    %17 = vector.shape_cast %16 : vector<1x1x256xf32> to vector<1x256xf32>
    %c0_18 = arith.constant 0 : index
    %18 = memref.load %arg1[%c0_18] : memref<2xf32, #tpu.memory_space<smem>>
    %c1_19 = arith.constant 1 : index
    %19 = memref.load %arg1[%c1_19] : memref<2xf32, #tpu.memory_space<smem>>
    %c0_20 = arith.constant 0 : index
    %c0_21 = arith.constant 0 : index
    %c0_22 = arith.constant 0 : index
    %20 = vector.load %arg2[%c0_20, %c0_21, %c0_22] : memref<1x16x256xf32, #tpu.memory_space<vmem>>, vector<1x16x256xf32>
    %21 = vector.shape_cast %20 : vector<1x16x256xf32> to vector<16x256xf32>
    %c0_23 = arith.constant 0 : index
    %c0_24 = arith.constant 0 : index
    %c0_25 = arith.constant 0 : index
    %22 = vector.load %arg3[%c0_23, %c0_24, %c0_25] : memref<1x16x256xf32, #tpu.memory_space<vmem>>, vector<1x16x256xf32>
    %23 = vector.shape_cast %22 : vector<1x16x256xf32> to vector<16x256xf32>
    %24 = tpu.concatenate %21, %23 in 0 : vector<16x256xf32>, vector<16x256xf32> -> vector<32x256xf32>
    %c0_26 = arith.constant 0 : index
    %c0_27 = arith.constant 0 : index
    %25 = vector.load %arg7[%c0_26, %c0_27] : memref<16x288xf32, #tpu.memory_space<vmem>>, vector<16x288xf32>
    %c17_i32 = arith.constant 17 : i32
    %26 = tpu.dynamic_rotate %24 by %c17_i32 dim 1 : vector<32x256xf32>, i32 -> vector<32x256xf32>
    %27 = vector.broadcast %1 : vector<1x256xf32> to vector<32x256xf32>
    %28 = arith.mulf %26, %27 : vector<32x256xf32>
    %c16_i32 = arith.constant 16 : i32
    %29 = tpu.dynamic_rotate %24 by %c16_i32 dim 1 : vector<32x256xf32>, i32 -> vector<32x256xf32>
    %30 = vector.broadcast %3 : vector<1x256xf32> to vector<32x256xf32>
    %31 = arith.mulf %29, %30 : vector<32x256xf32>
    %c15_i32 = arith.constant 15 : i32
    %32 = tpu.dynamic_rotate %24 by %c15_i32 dim 1 : vector<32x256xf32>, i32 -> vector<32x256xf32>
    %33 = vector.broadcast %5 : vector<1x256xf32> to vector<32x256xf32>
    %34 = arith.mulf %32, %33 : vector<32x256xf32>
    %c1_i32 = arith.constant 1 : i32
    %35 = tpu.dynamic_rotate %24 by %c1_i32 dim 1 : vector<32x256xf32>, i32 -> vector<32x256xf32>
    %36 = vector.broadcast %7 : vector<1x256xf32> to vector<32x256xf32>
    %37 = arith.mulf %35, %36 : vector<32x256xf32>
    %38 = vector.broadcast %9 : vector<1x256xf32> to vector<32x256xf32>
    %39 = arith.mulf %24, %38 : vector<32x256xf32>
    %c255_i32 = arith.constant 255 : i32
    %40 = tpu.dynamic_rotate %24 by %c255_i32 dim 1 : vector<32x256xf32>, i32 -> vector<32x256xf32>
    %41 = vector.broadcast %11 : vector<1x256xf32> to vector<32x256xf32>
    %42 = arith.mulf %40, %41 : vector<32x256xf32>
    %c241_i32 = arith.constant 241 : i32
    %43 = tpu.dynamic_rotate %24 by %c241_i32 dim 1 : vector<32x256xf32>, i32 -> vector<32x256xf32>
    %44 = vector.broadcast %13 : vector<1x256xf32> to vector<32x256xf32>
    %45 = arith.mulf %43, %44 : vector<32x256xf32>
    %c240_i32 = arith.constant 240 : i32
    %46 = tpu.dynamic_rotate %24 by %c240_i32 dim 1 : vector<32x256xf32>, i32 -> vector<32x256xf32>
    %47 = vector.broadcast %15 : vector<1x256xf32> to vector<32x256xf32>
    %48 = arith.mulf %46, %47 : vector<32x256xf32>
    %c239_i32 = arith.constant 239 : i32
    %49 = tpu.dynamic_rotate %24 by %c239_i32 dim 1 : vector<32x256xf32>, i32 -> vector<32x256xf32>
    %50 = vector.broadcast %17 : vector<1x256xf32> to vector<32x256xf32>
    %51 = arith.mulf %49, %50 : vector<32x256xf32>
    %52 = tpu.concatenate %28, %31, %34, %37, %39, %42, %45, %48, %51 in 0 : vector<32x256xf32>, vector<32x256xf32>, vector<32x256xf32>, vector<32x256xf32>, vector<32x256xf32>, vector<32x256xf32>, vector<32x256xf32>, vector<32x256xf32>, vector<32x256xf32> -> vector<288x256xf32>
    %cst = arith.constant dense<0.000000e+00> : vector<16x256xf32>
    %53 = tpu.matmul %25, %52, %cst {dimension_numbers = #tpu.dot_dimension_numbers<[1], [0], [0], [1], [0, 0, 1, 1], [], []>} : vector<16x288xf32>, vector<288x256xf32>, vector<16x256xf32> -> vector<16x256xf32>
    %c0_28 = arith.constant 0 : index
    %c0_29 = arith.constant 0 : index
    %54 = vector.load %arg8[%c0_28, %c0_29] : memref<16x1xf32, #tpu.memory_space<vmem>>, vector<16x1xf32>
    %55 = vector.broadcast %54 : vector<16x1xf32> to vector<16x256xf32>
    %56 = arith.addf %53, %55 : vector<16x256xf32>
    %cst_30 = arith.constant 0.000000e+00 : f32
    %57 = vector.broadcast %cst_30 : f32 to vector<16x256xf32>
    %58 = arith.cmpf oge, %56, %57 : vector<16x256xf32>
    %59 = vector.broadcast %18 : f32 to vector<16x256xf32>
    %60 = arith.mulf %56, %59 : vector<16x256xf32>
    %61 = arith.select %58, %56, %60 : vector<16x256xi1>, vector<16x256xf32>
    %c0_31 = arith.constant 0 : index
    %c0_32 = arith.constant 0 : index
    %c0_33 = arith.constant 0 : index
    %62 = vector.load %arg4[%c0_31, %c0_32, %c0_33] : memref<1x16x256xf32, #tpu.memory_space<vmem>>, vector<1x16x256xf32>
    %63 = vector.shape_cast %62 : vector<1x16x256xf32> to vector<16x256xf32>
    %64 = tpu.concatenate %61, %63 in 0 : vector<16x256xf32>, vector<16x256xf32> -> vector<32x256xf32>
    %c0_34 = arith.constant 0 : index
    %c0_35 = arith.constant 0 : index
    %65 = vector.load %arg9[%c0_34, %c0_35] : memref<16x288xf32, #tpu.memory_space<vmem>>, vector<16x288xf32>
    %c17_i32_36 = arith.constant 17 : i32
    %66 = tpu.dynamic_rotate %64 by %c17_i32_36 dim 1 : vector<32x256xf32>, i32 -> vector<32x256xf32>
    %67 = vector.broadcast %1 : vector<1x256xf32> to vector<32x256xf32>
    %68 = arith.mulf %66, %67 : vector<32x256xf32>
    %c16_i32_37 = arith.constant 16 : i32
    %69 = tpu.dynamic_rotate %64 by %c16_i32_37 dim 1 : vector<32x256xf32>, i32 -> vector<32x256xf32>
    %70 = vector.broadcast %3 : vector<1x256xf32> to vector<32x256xf32>
    %71 = arith.mulf %69, %70 : vector<32x256xf32>
    %c15_i32_38 = arith.constant 15 : i32
    %72 = tpu.dynamic_rotate %64 by %c15_i32_38 dim 1 : vector<32x256xf32>, i32 -> vector<32x256xf32>
    %73 = vector.broadcast %5 : vector<1x256xf32> to vector<32x256xf32>
    %74 = arith.mulf %72, %73 : vector<32x256xf32>
    %c1_i32_39 = arith.constant 1 : i32
    %75 = tpu.dynamic_rotate %64 by %c1_i32_39 dim 1 : vector<32x256xf32>, i32 -> vector<32x256xf32>
    %76 = vector.broadcast %7 : vector<1x256xf32> to vector<32x256xf32>
    %77 = arith.mulf %75, %76 : vector<32x256xf32>
    %78 = vector.broadcast %9 : vector<1x256xf32> to vector<32x256xf32>
    %79 = arith.mulf %64, %78 : vector<32x256xf32>
    %c255_i32_40 = arith.constant 255 : i32
    %80 = tpu.dynamic_rotate %64 by %c255_i32_40 dim 1 : vector<32x256xf32>, i32 -> vector<32x256xf32>
    %81 = vector.broadcast %11 : vector<1x256xf32> to vector<32x256xf32>
    %82 = arith.mulf %80, %81 : vector<32x256xf32>
    %c241_i32_41 = arith.constant 241 : i32
    %83 = tpu.dynamic_rotate %64 by %c241_i32_41 dim 1 : vector<32x256xf32>, i32 -> vector<32x256xf32>
    %84 = vector.broadcast %13 : vector<1x256xf32> to vector<32x256xf32>
    %85 = arith.mulf %83, %84 : vector<32x256xf32>
    %c240_i32_42 = arith.constant 240 : i32
    %86 = tpu.dynamic_rotate %64 by %c240_i32_42 dim 1 : vector<32x256xf32>, i32 -> vector<32x256xf32>
    %87 = vector.broadcast %15 : vector<1x256xf32> to vector<32x256xf32>
    %88 = arith.mulf %86, %87 : vector<32x256xf32>
    %c239_i32_43 = arith.constant 239 : i32
    %89 = tpu.dynamic_rotate %64 by %c239_i32_43 dim 1 : vector<32x256xf32>, i32 -> vector<32x256xf32>
    %90 = vector.broadcast %17 : vector<1x256xf32> to vector<32x256xf32>
    %91 = arith.mulf %89, %90 : vector<32x256xf32>
    %92 = tpu.concatenate %68, %71, %74, %77, %79, %82, %85, %88, %91 in 0 : vector<32x256xf32>, vector<32x256xf32>, vector<32x256xf32>, vector<32x256xf32>, vector<32x256xf32>, vector<32x256xf32>, vector<32x256xf32>, vector<32x256xf32>, vector<32x256xf32> -> vector<288x256xf32>
    %cst_44 = arith.constant dense<0.000000e+00> : vector<16x256xf32>
    %93 = tpu.matmul %65, %92, %cst_44 {dimension_numbers = #tpu.dot_dimension_numbers<[1], [0], [0], [1], [0, 0, 1, 1], [], []>} : vector<16x288xf32>, vector<288x256xf32>, vector<16x256xf32> -> vector<16x256xf32>
    %c0_45 = arith.constant 0 : index
    %c0_46 = arith.constant 0 : index
    %94 = vector.load %arg10[%c0_45, %c0_46] : memref<16x1xf32, #tpu.memory_space<vmem>>, vector<16x1xf32>
    %95 = vector.broadcast %94 : vector<16x1xf32> to vector<16x256xf32>
    %96 = arith.addf %93, %95 : vector<16x256xf32>
    %cst_47 = arith.constant 0.000000e+00 : f32
    %97 = vector.broadcast %cst_47 : f32 to vector<16x256xf32>
    %98 = arith.cmpf oge, %96, %97 : vector<16x256xf32>
    %99 = vector.broadcast %19 : f32 to vector<16x256xf32>
    %100 = arith.mulf %96, %99 : vector<16x256xf32>
    %101 = arith.select %98, %96, %100 : vector<16x256xi1>, vector<16x256xf32>
    %c0_48 = arith.constant 0 : index
    %c0_49 = arith.constant 0 : index
    %c0_50 = arith.constant 0 : index
    %102 = vector.load %arg5[%c0_48, %c0_49, %c0_50] : memref<1x16x256xf32, #tpu.memory_space<vmem>>, vector<1x16x256xf32>
    %103 = vector.shape_cast %102 : vector<1x16x256xf32> to vector<16x256xf32>
    %104 = tpu.concatenate %101, %103 in 0 : vector<16x256xf32>, vector<16x256xf32> -> vector<32x256xf32>
    %c0_51 = arith.constant 0 : index
    %c0_52 = arith.constant 0 : index
    %105 = vector.load %arg11[%c0_51, %c0_52] : memref<3x288xf32, #tpu.memory_space<vmem>>, vector<3x288xf32>
    %c17_i32_53 = arith.constant 17 : i32
    %106 = tpu.dynamic_rotate %104 by %c17_i32_53 dim 1 : vector<32x256xf32>, i32 -> vector<32x256xf32>
    %107 = vector.broadcast %1 : vector<1x256xf32> to vector<32x256xf32>
    %108 = arith.mulf %106, %107 : vector<32x256xf32>
    %c16_i32_54 = arith.constant 16 : i32
    %109 = tpu.dynamic_rotate %104 by %c16_i32_54 dim 1 : vector<32x256xf32>, i32 -> vector<32x256xf32>
    %110 = vector.broadcast %3 : vector<1x256xf32> to vector<32x256xf32>
    %111 = arith.mulf %109, %110 : vector<32x256xf32>
    %c15_i32_55 = arith.constant 15 : i32
    %112 = tpu.dynamic_rotate %104 by %c15_i32_55 dim 1 : vector<32x256xf32>, i32 -> vector<32x256xf32>
    %113 = vector.broadcast %5 : vector<1x256xf32> to vector<32x256xf32>
    %114 = arith.mulf %112, %113 : vector<32x256xf32>
    %c1_i32_56 = arith.constant 1 : i32
    %115 = tpu.dynamic_rotate %104 by %c1_i32_56 dim 1 : vector<32x256xf32>, i32 -> vector<32x256xf32>
    %116 = vector.broadcast %7 : vector<1x256xf32> to vector<32x256xf32>
    %117 = arith.mulf %115, %116 : vector<32x256xf32>
    %118 = vector.broadcast %9 : vector<1x256xf32> to vector<32x256xf32>
    %119 = arith.mulf %104, %118 : vector<32x256xf32>
    %c255_i32_57 = arith.constant 255 : i32
    %120 = tpu.dynamic_rotate %104 by %c255_i32_57 dim 1 : vector<32x256xf32>, i32 -> vector<32x256xf32>
    %121 = vector.broadcast %11 : vector<1x256xf32> to vector<32x256xf32>
    %122 = arith.mulf %120, %121 : vector<32x256xf32>
    %c241_i32_58 = arith.constant 241 : i32
    %123 = tpu.dynamic_rotate %104 by %c241_i32_58 dim 1 : vector<32x256xf32>, i32 -> vector<32x256xf32>
    %124 = vector.broadcast %13 : vector<1x256xf32> to vector<32x256xf32>
    %125 = arith.mulf %123, %124 : vector<32x256xf32>
    %c240_i32_59 = arith.constant 240 : i32
    %126 = tpu.dynamic_rotate %104 by %c240_i32_59 dim 1 : vector<32x256xf32>, i32 -> vector<32x256xf32>
    %127 = vector.broadcast %15 : vector<1x256xf32> to vector<32x256xf32>
    %128 = arith.mulf %126, %127 : vector<32x256xf32>
    %c239_i32_60 = arith.constant 239 : i32
    %129 = tpu.dynamic_rotate %104 by %c239_i32_60 dim 1 : vector<32x256xf32>, i32 -> vector<32x256xf32>
    %130 = vector.broadcast %17 : vector<1x256xf32> to vector<32x256xf32>
    %131 = arith.mulf %129, %130 : vector<32x256xf32>
    %132 = tpu.concatenate %108, %111, %114, %117, %119, %122, %125, %128, %131 in 0 : vector<32x256xf32>, vector<32x256xf32>, vector<32x256xf32>, vector<32x256xf32>, vector<32x256xf32>, vector<32x256xf32>, vector<32x256xf32>, vector<32x256xf32>, vector<32x256xf32> -> vector<288x256xf32>
    %cst_61 = arith.constant dense<0.000000e+00> : vector<3x256xf32>
    %133 = tpu.matmul %105, %132, %cst_61 {dimension_numbers = #tpu.dot_dimension_numbers<[1], [0], [0], [1], [0, 0, 1, 1], [], []>} : vector<3x288xf32>, vector<288x256xf32>, vector<3x256xf32> -> vector<3x256xf32>
    %c0_62 = arith.constant 0 : index
    %c0_63 = arith.constant 0 : index
    %134 = vector.load %arg12[%c0_62, %c0_63] : memref<3x1xf32, #tpu.memory_space<vmem>>, vector<3x1xf32>
    %135 = vector.broadcast %134 : vector<3x1xf32> to vector<3x256xf32>
    %136 = arith.addf %133, %135 : vector<3x256xf32>
    %137 = arith.negf %136 : vector<3x256xf32>
    %138 = math.exp %137 : vector<3x256xf32>
    %cst_64 = arith.constant 1.000000e+00 : f32
    %139 = vector.broadcast %cst_64 : f32 to vector<3x256xf32>
    %140 = arith.addf %139, %138 : vector<3x256xf32>
    %141 = arith.divf %139, %140 : vector<3x256xf32>
    %c0_65 = arith.constant 0 : index
    %c0_66 = arith.constant 0 : index
    %c0_67 = arith.constant 0 : index
    %142 = vector.load %arg13[%c0_65, %c0_66, %c0_67] : memref<1x3x256xf32, #tpu.memory_space<vmem>>, vector<1x3x256xf32>
    %143 = vector.shape_cast %142 : vector<1x3x256xf32> to vector<3x256xf32>
    %144 = vector.shape_cast %141 : vector<3x256xf32> to vector<1x3x256xf32>
    tpu.vector_store %arg13[%c0_65, %c0_66, %c0_67], %144 {strides = array<i32>} : memref<1x3x256xf32, #tpu.memory_space<vmem>>, vector<1x3x256xf32>,
    return
  }
  func.func @transform_0(%arg0: i32) -> i32 {
    %c0_i32 = arith.constant 0 : i32
    %c0_i32_0 = arith.constant 0 : i32
    return %c0_i32 : i32
  }
  func.func @transform_1(%arg0: i32) -> (i32, i32, i32) {
    %c0_i32 = arith.constant 0 : i32
    %c0_i32_0 = arith.constant 0 : i32
    %c0_i32_1 = arith.constant 0 : i32
    return %arg0, %c0_i32, %c0_i32_0 : i32, i32, i32
  }
  func.func @transform_2(%arg0: i32) -> (i32, i32, i32) {
    %c0_i32 = arith.constant 0 : i32
    %c0_i32_0 = arith.constant 0 : i32
    %c0_i32_1 = arith.constant 0 : i32
    return %arg0, %c0_i32, %c0_i32_0 : i32, i32, i32
  }
  func.func @transform_3(%arg0: i32) -> (i32, i32, i32) {
    %c0_i32 = arith.constant 0 : i32
    %c0_i32_0 = arith.constant 0 : i32
    %c0_i32_1 = arith.constant 0 : i32
    return %arg0, %c0_i32, %c0_i32_0 : i32, i32, i32
  }
  func.func @transform_4(%arg0: i32) -> (i32, i32, i32) {
    %c0_i32 = arith.constant 0 : i32
    %c0_i32_0 = arith.constant 0 : i32
    %c0_i32_1 = arith.constant 0 : i32
    return %arg0, %c0_i32, %c0_i32_0 : i32, i32, i32
  }
  func.func @transform_5(%arg0: i32) -> (i32, i32, i32) {
    %c0_i32 = arith.constant 0 : i32
    %c0_i32_0 = arith.constant 0 : i32
    %c0_i32_1 = arith.constant 0 : i32
    %c0_i32_2 = arith.constant 0 : i32
    return %c0_i32, %c0_i32_0, %c0_i32_1 : i32, i32, i32
  }
  func.func @transform_6(%arg0: i32) -> (i32, i32) {
    %c0_i32 = arith.constant 0 : i32
    %c0_i32_0 = arith.constant 0 : i32
    %c0_i32_1 = arith.constant 0 : i32
    return %c0_i32, %c0_i32_0 : i32, i32
  }
  func.func @transform_7(%arg0: i32) -> (i32, i32) {
    %c0_i32 = arith.constant 0 : i32
    %c0_i32_0 = arith.constant 0 : i32
    %c0_i32_1 = arith.constant 0 : i32
    return %c0_i32, %c0_i32_0 : i32, i32
  }
  func.func @transform_8(%arg0: i32) -> (i32, i32) {
    %c0_i32 = arith.constant 0 : i32
    %c0_i32_0 = arith.constant 0 : i32
    %c0_i32_1 = arith.constant 0 : i32
    return %c0_i32, %c0_i32_0 : i32, i32
  }
  func.func @transform_9(%arg0: i32) -> (i32, i32) {
    %c0_i32 = arith.constant 0 : i32
    %c0_i32_0 = arith.constant 0 : i32
    %c0_i32_1 = arith.constant 0 : i32
    return %c0_i32, %c0_i32_0 : i32, i32
  }
  func.func @transform_10(%arg0: i32) -> (i32, i32) {
    %c0_i32 = arith.constant 0 : i32
    %c0_i32_0 = arith.constant 0 : i32
    %c0_i32_1 = arith.constant 0 : i32
    return %c0_i32, %c0_i32_0 : i32, i32
  }
  func.func @transform_11(%arg0: i32) -> (i32, i32) {
    %c0_i32 = arith.constant 0 : i32
    %c0_i32_0 = arith.constant 0 : i32
    %c0_i32_1 = arith.constant 0 : i32
    return %c0_i32, %c0_i32_0 : i32, i32
  }
  func.func @transform_12(%arg0: i32) -> (i32, i32, i32) {
    %c0_i32 = arith.constant 0 : i32
    %c0_i32_0 = arith.constant 0 : i32
    %c0_i32_1 = arith.constant 0 : i32
    return %arg0, %c0_i32, %c0_i32_0 : i32, i32, i32
  }
}

</mosaic_0001>

<bundles_post_ra>
// kernel: decoder_forward.1
= control target key start
LH: loop header
LB: loop body
LE: loop exit
PB: predicated region body
PF: predicated region fallthrough
CT: control target
= control target key end

     0   :  { %17 = vsyncpa [#allocation3], 0  ;;  %s2510_s21 = smov 0   ;;  %s4100_s0 = inlined_call_operand.vmem [shape: f32[2], index: 0, kind: input, shape index: {}]   ;;  %s4101_s1 = inlined_call_operand.vmem [shape: f32[2,16,256], index: 1, kind: input, shape index: {}]   ;;  %s4102_s2 = inlined_call_operand.vmem [shape: f32[2,16,256], index: 2, kind: input, shape index: {}]   ;;  %s4103_s3 = inlined_call_operand.vmem [shape: f32[2,16,256], index: 3, kind: input, shape index: {}]   ;;  %s4104_s4 = inlined_call_operand.vmem [shape: f32[2,16,256], index: 4, kind: input, shape index: {}]   ;;  %s4105_s5 = inlined_call_operand.vmem [shape: f32[9,1,256], index: 5, kind: input, shape index: {}]   ;;  %s4106_s6 = inlined_call_operand.vmem [shape: f32[16,288], index: 6, kind: input, shape index: {}]   ;;  %s4107_s7 = inlined_call_operand.vmem [shape: f32[16,1], index: 7, kind: input, shape index: {}]   ;;  %s4108_s8 = inlined_call_operand.vmem [shape: f32[16,288], index: 8, kind: input, shape index: {}]   ;;  %s4109_s9 = inlined_call_operand.vmem [shape: f32[16,1], index: 9, kind: input, shape index: {}]   ;;  %s4110_s10 = inlined_call_operand.vmem [shape: f32[3,288], index: 10, kind: input, shape index: {}]   ;;  %s4111_s11 = inlined_call_operand.vmem [shape: f32[3,1], index: 11, kind: input, shape index: {}]   ;;  %s4112_s12 = inlined_call_operand.vmem [shape: f32[2,3,256], index: 12, kind: output, shape index: {}]  }
   0x1 LB: > { %s2083_s22 = sadd.s32 4294967295, %s2432_s21   ;;  %p2085_p0 = scmp.ge.s32.totalorder %s2432_s21, 1  ;;  %s2432_s21 = sphi %s2510_s21, %s23_s21  }
   0x2   : > { %p326_p1 = scmp.lt.s32.totalorder %s2432_s21, 3  ;;  %s339_s25 = sshll.u32 %s4100_s0, 4  ;;  %s340_s25 = int_to_ptr.vmem [resolvable:$true] %s339_s25 }
   0x3   : > { %p2367_p3 = scmp.eq.s32.totalorder %s2083_s22, 0  ;;  %s2407_s27 = scalar_lea.vmem %s340_s25, 16 }
   0x4   : > { %p2521_p2 = pnand %p2085_p0, %p326_p1  ;;  %p2408_p6 = scmp.ne.s32.totalorder %s340_s25, %s2407_s27 }
   0x5   : > { %p2415_p10 = scmp.lt.s32.totalorder %s340_s25, %s340_s25  ;;  %p2416_p11 = scmp.lt.s32.totalorder %s2407_s27, %s2407_s27 }
   0x6   : > { %p2363_p4 = pneg %p2521_p2 }
   0x7   : > { %p2417_p12 = por %p2416_p11, %p2415_p10 }
   0x8   : > { %p2364_p5 = pnand %p2367_p3, %p2363_p4 }
   0xa   : > { %p2409_p7 = pneg %p2364_p5 }
   0xc   : > { %p2410_p8 = pnand %p2409_p7, %p2408_p6 }
   0xe   : > { %p2411_p9 = pneg %p2410_p8 }
  0x10   : > { %p2418_p13 = pnand %p2417_p12, %p2411_p9 }
  0x12   : > { %2421 = shalt.err (!%p2418_p13)
}
  0x13   : > { %s2434_s28 = smov [#allocation2]   ;;  %405 = sbr.rel (%p2521_p2) target bundleno = 1389 (0x56d), region = 68 }
  0x14   : > { %2366 = dma.vmem_to_smem (!%p2364_p5), %s340_s25, 16, %s2434_s28, [#allocation3]  }
  0x1a   : > { %2427 = dma.done.wait (%p2367_p3), [#allocation3], 16  }
  0x1b   : > { %2429 = vsyncadd (%p2367_p3), [#allocation3], 4294967280 }
  0x1c   : > { %411 = sfence }
  0x1d   : > { %p463_p0 = scmp.lt.s32.totalorder %s2083_s22, 1  ;;  %s2435_s15 = smov 17   ;;  %v537_v8 = vlaneseq  ;;  %v488_v12 = vld [vmem:[%s4105_s5] sm:$0x3]  ;;  %v516_v14 = vld [vmem:[%s4106_s6 + $0x8] sm:$0xff]  ;;  %v4115_v23 = vmov 0.0  }
  0x1e   : > { %s2436_s19 = smov 16   ;;  %s2437_s20 = smov 15   ;;  %977 = vmatprep.mubr.f32.mxu0 %v516_v14  ;;  %1054 = vmatprep.mubr.f32.mxu1 %v4115_v23  ;;  %v2444_v34 = vmov 0   ;;  %v894_v35 = vld [vmem:[%s4107_s7] sm:$0xff]  ;;  %v895_v38 = vld [vmem:[%s4107_s7 + $0x8] sm:$0xff]  ;;  %vm906_vm8 = vcmask 261120  }
  0x1f   : > { %s4184_s22 = smov (!%p463_p0, %s2083_s22), 1  ;;  %s2438_s23 = smov 1   ;;  %v550_v9 = vshrl.u32 %v537_v8, 7  ;;  %v2673_v10 = vand.u32 127, %v537_v8  ;;  %2388 = vset.pattern.permute.xlu0 %v2444_v34  ;;  %2389 = vset.pattern.permute.xlu1 %v2444_v34  ;;  %v2100_v47 = vld [vmem:[%s4105_s5 + $0x2] sm:$0x3] }
  0x20   : > { %s2535_s29 = sshll.u32 %s4184_s22, 5  ;;  %s2439_s24 = smov 127  }
  0x21   : > { %s467_s14 = scalar_lea.vmem %s4101_s1, %s2535_s29  ;;  %s472_s18 = scalar_lea.vmem %s4102_s2, %s2535_s29  ;;  %v2675_v11 = vsub.s32 1, %v550_v9  ;;  %v2684_v13 = vsub.s32 0, %v550_v9  ;;  %vm539_vm0 = vcmp.lt.s32.totalorder %v2673_v10, 17  ;;  %vm583_vm1 = vcmp.lt.s32.totalorder %v2673_v10, 16 }
  0x22   : > { %v2541_v0 = vld [vmem:[%s467_s14 + $0x8] sm:$0xff]  ;;  %v2543_v1 = vld [vmem:[%s467_s14] sm:$0xff]  ;;  %v2549_v2 = vld [vmem:[%s467_s14 + $0x18] sm:$0xff]  ;;  %s2440_s25 = smov 113   ;;  %s4113_s26 = smov 112   ;;  %vm627_vm2 = vcmp.lt.s32.totalorder %v2673_v10, 15 }
  0x23   : > { %529 = vrot.lane.b32.xlu1 %v2541_v0, %s2435_s15  ;;  %521 = vrot.lane.b32.xlu0 %v2543_v1, %s2435_s15  ;;  %v2551_v3 = vld [vmem:[%s467_s14 + $0x10] sm:$0xff]  ;;  %v2563_v5 = vld [vmem:[%s472_s18] sm:$0xff]  ;;  %s2442_s27 = smov 111   ;;  %v2691_v17 = vrot.slane %v488_v12, %v2675_v11  ;;  %v2700_v19 = vrot.slane %v488_v12, %v2684_v13  ;;  %s2731_s14 = scalar_lea.vmem %s4103_s3, %s2535_s29  ;;  %v2756_v54 = vrot.slane %v2100_v47, %v2684_v13  ;;  %vm671_vm3 = vcmp.lt.s32.totalorder %v2673_v10, 1 }
  0x24   : > { %v2561_v4 = vld [vmem:[%s472_s18 + $0x10] sm:$0xff]  ;;  %v2569_v6 = vld [vmem:[%s472_s18 + $0x18] sm:$0xff]  ;;  %v2571_v7 = vld [vmem:[%s472_s18 + $0x8] sm:$0xff]  ;;  %v2759_v55 = vrot.slane %v2100_v47, %v2675_v11  ;;  %vm734_vm4 = vcmp.lt.s32.totalorder %v2673_v10, 127  ;;  %vm778_vm5 = vcmp.lt.s32.totalorder %v2673_v10, 113  ;;  %vm822_vm6 = vcmp.lt.s32.totalorder %v2673_v10, 112 }
  0x25   : > { %v2749_v48 = vld [vmem:[%s2731_s14 + $0x10] sm:$0xff]  ;;  %v2752_v53 = vld [vmem:[%s2731_s14] sm:$0xff]  ;;  %v2766_v56 = vld [vmem:[%s2731_s14 + $0x18] sm:$0xff]  ;;  %vm866_vm7 = vcmp.lt.s32.totalorder %v2673_v10, 111  ;;  %s505_s18 = sld [smem:[#allocation2]]  ;;  %s2108_s13 = sld [smem:[#allocation2 + $0x1]] }
  0x26   : > { %v2769_v59 = vld [vmem:[%s2731_s14 + $0x8] sm:$0xff] }
  0x27   : > { %531 = vrot.lane.b32.xlu1 %v2549_v2, %s2435_s15  ;;  %523 = vrot.lane.b32.xlu0 %v2551_v3, %s2435_s15  ;;  %v1544_v10 = vld [vmem:[%s4110_s10 + $0x8] sm:$0x7] }
  0x2b   : > { %527 = vrot.lane.b32.xlu1 %v2561_v4, %s2435_s15  ;;  %525 = vrot.lane.b32.xlu0 %v2563_v5, %s2435_s15 }
  0x2f   : > { %535 = vrot.lane.b32.xlu1 %v2569_v6, %s2435_s15  ;;  %533 = vrot.lane.b32.xlu0 %v2571_v7, %s2435_s15 }
  0x33   : > { %569 = vrot.lane.b32.xlu1 %v2551_v3, %s2436_s19  ;;  %567 = vrot.lane.b32.xlu0 %v2543_v1, %s2436_s19 }
  0x37   : > { %577 = vrot.lane.b32.xlu1 %v2549_v2, %s2436_s19  ;;  %575 = vrot.lane.b32.xlu0 %v2541_v0, %s2436_s19 }
  0x3b   : > { %573 = vrot.lane.b32.xlu1 %v2561_v4, %s2436_s19  ;;  %571 = vrot.lane.b32.xlu0 %v2563_v5, %s2436_s19 }
  0x3f   : > { %581 = vrot.lane.b32.xlu1 %v2569_v6, %s2436_s19  ;;  %579 = vrot.lane.b32.xlu0 %v2571_v7, %s2436_s19 }
  0x43   : > { %613 = vrot.lane.b32.xlu1 %v2551_v3, %s2437_s20  ;;  %611 = vrot.lane.b32.xlu0 %v2543_v1, %s2437_s20 }
  0x47   : > { %621 = vrot.lane.b32.xlu1 %v2549_v2, %s2437_s20  ;;  %619 = vrot.lane.b32.xlu0 %v2541_v0, %s2437_s20 }
  0x4b   : > { %617 = vrot.lane.b32.xlu1 %v2561_v4, %s2437_s20  ;;  %615 = vrot.lane.b32.xlu0 %v2563_v5, %s2437_s20 }
  0x4f   : > { %625 = vrot.lane.b32.xlu1 %v2569_v6, %s2437_s20  ;;  %623 = vrot.lane.b32.xlu0 %v2571_v7, %s2437_s20 }
  0x53   : > { %657 = vrot.lane.b32.xlu1 %v2551_v3, %s2438_s23  ;;  %655 = vrot.lane.b32.xlu0 %v2543_v1, %s2438_s23 }
  0x57   : > { %665 = vrot.lane.b32.xlu1 %v2549_v2, %s2438_s23  ;;  %663 = vrot.lane.b32.xlu0 %v2541_v0, %s2438_s23 }
  0x5b   : > { %661 = vrot.lane.b32.xlu1 %v2561_v4, %s2438_s23  ;;  %659 = vrot.lane.b32.xlu0 %v2563_v5, %s2438_s23 }
  0x5f   : > { %669 = vrot.lane.b32.xlu1 %v2569_v6, %s2438_s23  ;;  %667 = vrot.lane.b32.xlu0 %v2571_v7, %s2438_s23 }
  0x63   : > { %720 = vrot.lane.b32.xlu1 %v2551_v3, %s2439_s24  ;;  %718 = vrot.lane.b32.xlu0 %v2543_v1, %s2439_s24 }
  0x67   : > { %728 = vrot.lane.b32.xlu1 %v2549_v2, %s2439_s24  ;;  %726 = vrot.lane.b32.xlu0 %v2541_v0, %s2439_s24 }
  0x6b   : > { %724 = vrot.lane.b32.xlu1 %v2561_v4, %s2439_s24  ;;  %722 = vrot.lane.b32.xlu0 %v2563_v5, %s2439_s24 }
  0x6f   : > { %732 = vrot.lane.b32.xlu1 %v2569_v6, %s2439_s24  ;;  %730 = vrot.lane.b32.xlu0 %v2571_v7, %s2439_s24 }
  0x73   : > { %764 = vrot.lane.b32.xlu1 %v2551_v3, %s2440_s25  ;;  %762 = vrot.lane.b32.xlu0 %v2543_v1, %s2440_s25 }
  0x77   : > { %772 = vrot.lane.b32.xlu1 %v2549_v2, %s2440_s25  ;;  %770 = vrot.lane.b32.xlu0 %v2541_v0, %s2440_s25 }
  0x7b   : > { %768 = vrot.lane.b32.xlu1 %v2561_v4, %s2440_s25  ;;  %766 = vrot.lane.b32.xlu0 %v2563_v5, %s2440_s25 }
  0x7f   : > { %776 = vrot.lane.b32.xlu1 %v2569_v6, %s2440_s25  ;;  %774 = vrot.lane.b32.xlu0 %v2571_v7, %s2440_s25 }
  0x83   : > { %808 = vrot.lane.b32.xlu1 %v2551_v3, %s4113_s26  ;;  %806 = vrot.lane.b32.xlu0 %v2543_v1, %s4113_s26 }
  0x87   : > { %816 = vrot.lane.b32.xlu1 %v2549_v2, %s4113_s26  ;;  %814 = vrot.lane.b32.xlu0 %v2541_v0, %s4113_s26 }
  0x8b   : > { %852 = vrot.lane.b32.xlu1 %v2551_v3, %s2442_s27  ;;  %850 = vrot.lane.b32.xlu0 %v2543_v1, %s2442_s27 }
  0x8f   : > { %860 = vrot.lane.b32.xlu1 %v2549_v2, %s2442_s27  ;;  %858 = vrot.lane.b32.xlu0 %v2541_v0, %s2442_s27 }
  0x93   : > { %812 = vrot.lane.b32.xlu1 %v2561_v4, %s4113_s26  ;;  %810 = vrot.lane.b32.xlu0 %v2563_v5, %s4113_s26 }
  0x95   : > { %v530_v15 = vpop.permute.xlu1 %529  ;;  %v522_v16 = vpop.permute.xlu0 %521 }
  0x96   : > { %v540_v18 = vsel %vm539_vm0, %v522_v16, %v530_v15  ;;  %v544_v20 = vsel %vm539_vm0, %v530_v15, %v522_v16 }
  0x97   : > { %820 = vrot.lane.b32.xlu1 %v2569_v6, %s4113_s26  ;;  %818 = vrot.lane.b32.xlu0 %v2571_v7, %s4113_s26  ;;  %v560_v26 = vmul.f32 %v2691_v17, %v540_v18  ;;  %v559_v28 = vmul.f32 %v2700_v19, %v544_v20 }
  0x99   : > { %v532_v21 = vpop.permute.xlu1 %531  ;;  %v524_v22 = vpop.permute.xlu0 %523 }
  0x9a   : > { %v545_v24 = vsel %vm539_vm0, %v532_v21, %v524_v22  ;;  %v541_v25 = vsel %vm539_vm0, %v524_v22, %v532_v21 }
  0x9b   : > { %856 = vrot.lane.b32.xlu1 %v2561_v4, %s2442_s27  ;;  %854 = vrot.lane.b32.xlu0 %v2563_v5, %s2442_s27  ;;  %v562_v27 = vmul.f32 %v2691_v17, %v541_v25  ;;  %v561_v29 = vmul.f32 %v2700_v19, %v545_v24 }
  0x9d   : > { %v528_v30 = vpop.permute.xlu1 %527  ;;  %v526_v31 = vpop.permute.xlu0 %525  ;;  %v2123_v32 = vpack.c.bf16 %v562_v27, %v560_v26  ;;  %v2125_v33 = vpack.c.bf16 %v561_v29, %v559_v28 }
  0x9f   : > { %864 = vrot.lane.b32.xlu1 %v2569_v6, %s2442_s27  ;;  %862 = vrot.lane.b32.xlu0 %v2571_v7, %s2442_s27 }
  0xa0   : > { %2124 = vmatprep.subr.bf16.mxu0 %v2123_v32  ;;  %v2101_v32 = vld [vmem:[%s4105_s5 + $0x4] sm:$0x3] }
  0xa1   : > { %2126 = vmatpush1.bf16.msra.mxu0 %v2125_v33  ;;  %v536_v36 = vpop.permute.xlu1 %535  ;;  %v534_v37 = vpop.permute.xlu0 %533 }
  0xa2   : > { %v543_v39 = vsel %vm539_vm0, %v528_v30, %v536_v36  ;;  %v547_v40 = vsel %vm539_vm0, %v536_v36, %v528_v30  ;;  %v542_v41 = vsel %vm539_vm0, %v526_v31, %v534_v37  ;;  %v546_v42 = vsel %vm539_vm0, %v534_v37, %v526_v31 }
  0xa3   : > { %v565_v43 = vmul.f32 %v2700_v19, %v547_v40  ;;  %v566_v44 = vmul.f32 %v2691_v17, %v543_v39  ;;  %v563_v45 = vmul.f32 %v2700_v19, %v546_v42  ;;  %v564_v46 = vmul.f32 %v2691_v17, %v542_v41  ;;  %898 = vperm.xlu0 %2388, %v894_v35  }
  0xa4   : > { %903 = vperm.xlu1 %2389, %v895_v38   ;;  %v2812_v37 = vrot.slane %v2101_v32, %v2684_v13  ;;  %v2815_v38 = vrot.slane %v2101_v32, %v2675_v11 }
  0xa5   : > { %v570_v49 = vpop.permute.xlu1 %569  ;;  %v568_v50 = vpop.permute.xlu0 %567  ;;  %v2127_v51 = vpack.c.bf16 %v566_v44, %v564_v46  ;;  %v2129_v52 = vpack.c.bf16 %v565_v43, %v563_v45 }
  0xa7   : > { %2128 = vmatprep.subr.bf16.mxu0 %v2127_v51  ;;  %1096 = vrot.lane.b32.xlu0 %v2749_v48, %s2435_s15 }
  0xa8   : > { %2130 = vmatpush1.bf16.msra.mxu0 %v2129_v52  ;;  %1094 = vrot.lane.b32.xlu1 %v2752_v53, %s2435_s15 }
  0xa9   : > { %v578_v57 = vpop.permute.xlu1 %577  ;;  %v576_v58 = vpop.permute.xlu0 %575 }
  0xaa   : > { %v585_v60 = vsel %vm583_vm1, %v570_v49, %v578_v57  ;;  %v589_v61 = vsel %vm583_vm1, %v578_v57, %v570_v49  ;;  %v584_v62 = vsel %vm583_vm1, %v568_v50, %v576_v58  ;;  %v588_v63 = vsel %vm583_vm1, %v576_v58, %v568_v50 }
  0xab   : > { %v605_v8 = vmul.f32 %v2756_v54, %v589_v61  ;;  %v606_v9 = vmul.f32 %v2759_v55, %v585_v60  ;;  %v603_v12 = vmul.f32 %v2756_v54, %v588_v63  ;;  %v604_v14 = vmul.f32 %v2759_v55, %v584_v62  ;;  %1104 = vrot.lane.b32.xlu0 %v2766_v56, %s2435_s15 }
  0xac   : > { %1102 = vrot.lane.b32.xlu1 %v2769_v59, %s2435_s15 }
  0xad   : > { %v574_v15 = vpop.permute.xlu1 %573  ;;  %v572_v16 = vpop.permute.xlu0 %571  ;;  %v2131_v18 = vpack.c.bf16 %v606_v9, %v604_v14  ;;  %v2133_v20 = vpack.c.bf16 %v605_v8, %v603_v12 }
  0xaf   : > { %2132 = vmatprep.subr.bf16.mxu0 %v2131_v18  ;;  %1128 = vrot.lane.b32.xlu0 %v2749_v48, %s2436_s19 }
  0xb0   : > { %2134 = vmatpush1.bf16.msra.mxu0 %v2133_v20  ;;  %1126 = vrot.lane.b32.xlu1 %v2752_v53, %s2436_s19 }
  0xb1   : > { %v582_v21 = vpop.permute.xlu1 %581  ;;  %v580_v22 = vpop.permute.xlu0 %579 }
  0xb2   : > { %v587_v24 = vsel %vm583_vm1, %v574_v15, %v582_v21  ;;  %v591_v25 = vsel %vm583_vm1, %v582_v21, %v574_v15  ;;  %v586_v26 = vsel %vm583_vm1, %v572_v16, %v580_v22  ;;  %v590_v27 = vsel %vm583_vm1, %v580_v22, %v572_v16  ;;  %v2102_v16 = vld [vmem:[%s4105_s5 + $0x6] sm:$0x3] }
  0xb3   : > { %v609_v28 = vmul.f32 %v2756_v54, %v591_v25  ;;  %v610_v29 = vmul.f32 %v2759_v55, %v587_v24  ;;  %v607_v30 = vmul.f32 %v2756_v54, %v590_v27  ;;  %v608_v31 = vmul.f32 %v2759_v55, %v586_v26  ;;  %1136 = vrot.lane.b32.xlu0 %v2766_v56, %s2436_s19 }
  0xb4   : > { %1134 = vrot.lane.b32.xlu1 %v2769_v59, %s2436_s19  ;;  %v2862_v24 = vrot.slane %v2102_v16, %v2684_v13  ;;  %v2865_v25 = vrot.slane %v2102_v16, %v2675_v11 }
  0xb5   : > { %v614_v33 = vpop.permute.xlu1 %613  ;;  %v612_v34 = vpop.permute.xlu0 %611  ;;  %v2135_v35 = vpack.c.bf16 %v610_v29, %v608_v31  ;;  %v2137_v36 = vpack.c.bf16 %v609_v28, %v607_v30  ;;  %v2103_v28 = vld [vmem:[%s4105_s5 + $0x8] sm:$0x3] }
  0xb7   : > { %2136 = vmatprep.subr.bf16.mxu0 %v2135_v35  ;;  %1160 = vrot.lane.b32.xlu0 %v2749_v48, %s2437_s20 }
  0xb8   : > { %2138 = vmatpush1.bf16.msra.mxu0 %v2137_v36  ;;  %1158 = vrot.lane.b32.xlu1 %v2752_v53, %s2437_s20 }
  0xb9   : > { %v622_v39 = vpop.permute.xlu1 %621  ;;  %v620_v40 = vpop.permute.xlu0 %619 }
  0xba   : > { %v629_v41 = vsel %vm627_vm2, %v614_v33, %v622_v39  ;;  %v633_v42 = vsel %vm627_vm2, %v622_v39, %v614_v33  ;;  %v628_v43 = vsel %vm627_vm2, %v612_v34, %v620_v40  ;;  %v632_v44 = vsel %vm627_vm2, %v620_v40, %v612_v34 }
  0xbb   : > { %v649_v45 = vmul.f32 %v2812_v37, %v633_v42  ;;  %v650_v46 = vmul.f32 %v2815_v38, %v629_v41  ;;  %v647_v47 = vmul.f32 %v2812_v37, %v632_v44  ;;  %v648_v49 = vmul.f32 %v2815_v38, %v628_v43  ;;  %1168 = vrot.lane.b32.xlu0 %v2766_v56, %s2437_s20 }
  0xbc   : > { %1166 = vrot.lane.b32.xlu1 %v2769_v59, %s2437_s20  ;;  %v2887_v39 = vrot.slane %v2103_v28, %v2675_v11 }
  0xbd   : > { %v618_v50 = vpop.permute.xlu1 %617  ;;  %v616_v51 = vpop.permute.xlu0 %615  ;;  %v2139_v52 = vpack.c.bf16 %v650_v46, %v648_v49  ;;  %v2141_v57 = vpack.c.bf16 %v649_v45, %v647_v47  ;;  %v2894_v46 = vrot.slane %v2103_v28, %v2684_v13 }
  0xbe   : > { %v711_v44 = vmul.f32 %v2887_v39, %v2541_v0  ;;  %v713_v45 = vmul.f32 %v2887_v39, %v2549_v2  ;;  %v715_v16 = vmul.f32 %v2887_v39, %v2571_v7 }
  0xbf   : > { %2140 = vmatprep.subr.bf16.mxu0 %v2139_v52  ;;  %1192 = vrot.lane.b32.xlu0 %v2749_v48, %s2438_s23 }
  0xc0   : > { %2142 = vmatpush1.bf16.msra.mxu0 %v2141_v57  ;;  %1190 = vrot.lane.b32.xlu1 %v2752_v53, %s2438_s23 }
  0xc1   : > { %v626_v58 = vpop.permute.xlu1 %625  ;;  %v624_v60 = vpop.permute.xlu0 %623 }
  0xc2   : > { %v631_v61 = vsel %vm627_vm2, %v618_v50, %v626_v58  ;;  %v635_v62 = vsel %vm627_vm2, %v626_v58, %v618_v50  ;;  %v630_v63 = vsel %vm627_vm2, %v616_v51, %v624_v60  ;;  %v634_v8 = vsel %vm627_vm2, %v624_v60, %v616_v51 }
  0xc3   : > { %v653_v9 = vmul.f32 %v2812_v37, %v635_v62  ;;  %v654_v12 = vmul.f32 %v2815_v38, %v631_v61  ;;  %v651_v14 = vmul.f32 %v2812_v37, %v634_v8  ;;  %v652_v15 = vmul.f32 %v2815_v38, %v630_v63  ;;  %1200 = vrot.lane.b32.xlu0 %v2766_v56, %s2438_s23  ;;  %v2104_v61 = vld [vmem:[%s4105_s5 + $0xa] sm:$0x3] }
  0xc4   : > { %1198 = vrot.lane.b32.xlu1 %v2769_v59, %s2438_s23  ;;  %v2155_v62 = vpack.c.bf16 %v713_v45, %v711_v44  ;;  %v710_v63 = vmul.f32 %v2894_v46, %v2543_v1  ;;  %v712_v8 = vmul.f32 %v2894_v46, %v2551_v3  ;;  %v714_v3 = vmul.f32 %v2894_v46, %v2563_v5 }
  0xc5   : > { %v658_v18 = vpop.permute.xlu1 %657  ;;  %v656_v20 = vpop.permute.xlu0 %655  ;;  %v2143_v21 = vpack.c.bf16 %v654_v12, %v652_v15  ;;  %v2145_v22 = vpack.c.bf16 %v653_v9, %v651_v14 }
  0xc6   : > { %v2157_v1 = vpack.c.bf16 %v712_v8, %v710_v63 }
  0xc7   : > { %2144 = vmatprep.subr.bf16.mxu0 %v2143_v21  ;;  %1232 = vrot.lane.b32.xlu0 %v2749_v48, %s2439_s24  ;;  %v716_v21 = vmul.f32 %v2894_v46, %v2561_v4 }
  0xc8   : > { %2146 = vmatpush1.bf16.msra.mxu0 %v2145_v22  ;;  %1230 = vrot.lane.b32.xlu1 %v2752_v53, %s2439_s24  ;;  %v2928_v22 = vrot.slane %v2104_v61, %v2684_v13 }
  0xc9   : > { %v666_v26 = vpop.permute.xlu1 %665  ;;  %v664_v27 = vpop.permute.xlu0 %663 }
  0xca   : > { %v673_v29 = vsel %vm671_vm3, %v658_v18, %v666_v26  ;;  %v677_v30 = vsel %vm671_vm3, %v666_v26, %v658_v18  ;;  %v672_v31 = vsel %vm671_vm3, %v656_v20, %v664_v27  ;;  %v676_v32 = vsel %vm671_vm3, %v664_v27, %v656_v20 }
  0xcb   : > { %v693_v33 = vmul.f32 %v2862_v24, %v677_v30  ;;  %v694_v34 = vmul.f32 %v2865_v25, %v673_v29  ;;  %v691_v35 = vmul.f32 %v2862_v24, %v676_v32  ;;  %v692_v36 = vmul.f32 %v2865_v25, %v672_v31 }
  0xcc   : > { %v717_v18 = vmul.f32 %v2887_v39, %v2569_v6  ;;  %v2921_v20 = vrot.slane %v2104_v61, %v2675_v11  ;;  %v2161_v31 = vpack.c.bf16 %v716_v21, %v714_v3 }
  0xcd   : > { %v662_v40 = vpop.permute.xlu1 %661  ;;  %v660_v41 = vpop.permute.xlu0 %659  ;;  %v2147_v42 = vpack.c.bf16 %v694_v34, %v692_v36  ;;  %v2149_v43 = vpack.c.bf16 %v693_v33, %v691_v35 }
  0xce   : > { %v2159_v6 = vpack.c.bf16 %v717_v18, %v715_v16 }
  0xcf   : > { %2148 = vmatprep.subr.bf16.mxu0 %v2147_v42 }
  0xd0   : > { %2150 = vmatpush1.bf16.msra.mxu0 %v2149_v43 }
  0xd1   : > { %v670_v47 = vpop.permute.xlu1 %669  ;;  %v668_v49 = vpop.permute.xlu0 %667 }
  0xd2   : > { %v675_v50 = vsel %vm671_vm3, %v662_v40, %v670_v47  ;;  %v679_v51 = vsel %vm671_vm3, %v670_v47, %v662_v40  ;;  %v674_v52 = vsel %vm671_vm3, %v660_v41, %v668_v49  ;;  %v678_v0 = vsel %vm671_vm3, %v668_v49, %v660_v41 }
  0xd3   : > { %v697_v57 = vmul.f32 %v2862_v24, %v679_v51  ;;  %v698_v2 = vmul.f32 %v2865_v25, %v675_v50  ;;  %v695_v58 = vmul.f32 %v2862_v24, %v678_v0  ;;  %v696_v60 = vmul.f32 %v2865_v25, %v674_v52  ;;  %v2105_v0 = vld [vmem:[%s4105_s5 + $0xc] sm:$0x3] }
  0xd4   : > { %v2959_v61 = vrot.slane %v2105_v0, %v2684_v13 }
  0xd5   : > { %v721_v9 = vpop.permute.xlu1 %720  ;;  %v719_v12 = vpop.permute.xlu0 %718  ;;  %v2151_v14 = vpack.c.bf16 %v698_v2, %v696_v60  ;;  %v2153_v15 = vpack.c.bf16 %v697_v57, %v695_v58 }
  0xd6   : > { %4144 = vst [vmem:[#allocation5_spill] sm:$0xff] %v2959_v61 }
  0xd7   : > { %2152 = vmatprep.subr.bf16.mxu0 %v2151_v14 }
  0xd8   : > { %2154 = vmatpush1.bf16.msra.mxu0 %v2153_v15 }
  0xd9   : > { %v729_v7 = vpop.permute.xlu1 %728  ;;  %v727_v26 = vpop.permute.xlu0 %726  ;;  %2156 = vmatprep.subr.bf16.mxu0 %v2155_v62  ;;  %v2962_v62 = vrot.slane %v2105_v0, %v2675_v11 }
  0xda   : > { %v736_v27 = vsel %vm734_vm4, %v721_v9, %v729_v7  ;;  %v740_v28 = vsel %vm734_vm4, %v729_v7, %v721_v9  ;;  %v735_v29 = vsel %vm734_vm4, %v719_v12, %v727_v26  ;;  %v739_v5 = vsel %vm734_vm4, %v727_v26, %v719_v12 }
  0xdb   : > { %v757_v4 = vmul.f32 %v2921_v20, %v740_v28  ;;  %v755_v30 = vmul.f32 %v2921_v20, %v739_v5  ;;  %v756_v32 = vmul.f32 %v2928_v22, %v736_v27  ;;  %v754_v33 = vmul.f32 %v2928_v22, %v735_v29  ;;  %4145 = vst [vmem:[#allocation6_spill] sm:$0xff] %v2962_v62 }
  0xdc   : > { %2158 = vmatpush1.bf16.msra.mxu0 %v2157_v1 }
  0xdd   : > { %v725_v34 = vpop.permute.xlu1 %724  ;;  %v723_v35 = vpop.permute.xlu0 %722  ;;  %2160 = vmatprep.subr.bf16.mxu0 %v2159_v6  ;;  %v2163_v36 = vpack.c.bf16 %v757_v4, %v755_v30  ;;  %v2165_v42 = vpack.c.bf16 %v756_v32, %v754_v33 }
  0xe0   : > { %2162 = vmatpush1.bf16.msra.mxu0 %v2161_v31 }
  0xe1   : > { %v733_v40 = vpop.permute.xlu1 %732  ;;  %v731_v41 = vpop.permute.xlu0 %730  ;;  %2164 = vmatprep.subr.bf16.mxu0 %v2163_v36 }
  0xe2   : > { %v738_v43 = vsel %vm734_vm4, %v725_v34, %v733_v40  ;;  %v742_v44 = vsel %vm734_vm4, %v733_v40, %v725_v34  ;;  %v737_v45 = vsel %vm734_vm4, %v723_v35, %v731_v41  ;;  %v741_v47 = vsel %vm734_vm4, %v731_v41, %v723_v35  ;;  %v2106_v35 = vld [vmem:[%s4105_s5 + $0xe] sm:$0x3] }
  0xe3   : > { %v760_v49 = vmul.f32 %v2928_v22, %v738_v43  ;;  %v761_v50 = vmul.f32 %v2921_v20, %v742_v44  ;;  %v758_v51 = vmul.f32 %v2928_v22, %v737_v45  ;;  %v759_v52 = vmul.f32 %v2921_v20, %v741_v47 }
  0xe4   : > { %2166 = vmatpush1.bf16.msra.mxu0 %v2165_v42  ;;  %v2993_v43 = vrot.slane %v2106_v35, %v2684_v13  ;;  %v2996_v44 = vrot.slane %v2106_v35, %v2675_v11 }
  0xe5   : > { %v765_v57 = vpop.permute.xlu1 %764  ;;  %v763_v2 = vpop.permute.xlu0 %762  ;;  %v2167_v58 = vpack.c.bf16 %v761_v50, %v759_v52  ;;  %v2169_v60 = vpack.c.bf16 %v760_v49, %v758_v51 }
  0xe6   : > { %4146 = vst [vmem:[#allocation7_spill] sm:$0xff] %v2993_v43  ;;  %4147 = vst [vmem:[#allocation8_spill] sm:$0xff] %v2996_v44 }
  0xe7   : > { %2168 = vmatprep.subr.bf16.mxu0 %v2167_v58 }
  0xe8   : > { %2170 = vmatpush1.bf16.msra.mxu0 %v2169_v60  ;;  %v2107_v60 = vld [vmem:[%s4105_s5 + $0x10] sm:$0x3] }
  0xe9   : > { %v773_v63 = vpop.permute.xlu1 %772  ;;  %v771_v8 = vpop.permute.xlu0 %770 }
  0xea   : > { %v780_v9 = vsel %vm778_vm5, %v765_v57, %v773_v63  ;;  %v784_v12 = vsel %vm778_vm5, %v773_v63, %v765_v57  ;;  %v779_v14 = vsel %vm778_vm5, %v763_v2, %v771_v8  ;;  %v783_v15 = vsel %vm778_vm5, %v771_v8, %v763_v2 }
  0xeb   : > { %v800_v16 = vmul.f32 %v2959_v61, %v780_v9  ;;  %v801_v18 = vmul.f32 %v2962_v62, %v784_v12  ;;  %v798_v1 = vmul.f32 %v2959_v61, %v779_v14  ;;  %v799_v3 = vmul.f32 %v2962_v62, %v783_v15 }
  0xec   : > { %v3015_v14 = vrot.slane %v2107_v60, %v2675_v11  ;;  %v3018_v15 = vrot.slane %v2107_v60, %v2684_v13 }
  0xed   : > { %v769_v21 = vpop.permute.xlu1 %768  ;;  %v767_v7 = vpop.permute.xlu0 %766  ;;  %v2171_v26 = vpack.c.bf16 %v801_v18, %v799_v3  ;;  %v2173_v6 = vpack.c.bf16 %v800_v16, %v798_v1 }
  0xee   : > { %4148 = vst [vmem:[#allocation9_spill] sm:$0xff] %v3015_v14  ;;  %4149 = vst [vmem:[#allocation10_spill] sm:$0xff] %v3018_v15 }
  0xef   : > { %2172 = vmatprep.subr.bf16.mxu0 %v2171_v26 }
  0xf0   : > { %2174 = vmatpush1.bf16.msra.mxu0 %v2173_v6 }
  0xf1   : > { %v777_v27 = vpop.permute.xlu1 %776  ;;  %v775_v28 = vpop.permute.xlu0 %774 }
  0xf2   : > { %v782_v29 = vsel %vm778_vm5, %v769_v21, %v777_v27  ;;  %v786_v5 = vsel %vm778_vm5, %v777_v27, %v769_v21  ;;  %v781_v4 = vsel %vm778_vm5, %v767_v7, %v775_v28  ;;  %v785_v30 = vsel %vm778_vm5, %v775_v28, %v767_v7 }
  0xf3   : > { %v804_v31 = vmul.f32 %v2959_v61, %v782_v29  ;;  %v805_v32 = vmul.f32 %v2962_v62, %v786_v5  ;;  %v802_v33 = vmul.f32 %v2959_v61, %v781_v4  ;;  %v803_v34 = vmul.f32 %v2962_v62, %v785_v30 }
  0xf5   : > { %v809_v36 = vpop.permute.xlu1 %808  ;;  %v807_v40 = vpop.permute.xlu0 %806  ;;  %v2175_v41 = vpack.c.bf16 %v805_v32, %v803_v34  ;;  %v2177_v42 = vpack.c.bf16 %v804_v31, %v802_v33 }
  0xf7   : > { %2176 = vmatprep.subr.bf16.mxu0 %v2175_v41 }
  0xf8   : > { %2178 = vmatpush1.bf16.msra.mxu0 %v2177_v42 }
  0xf9   : > { %v817_v45 = vpop.permute.xlu1 %816  ;;  %v815_v47 = vpop.permute.xlu0 %814 }
  0xfa   : > { %v824_v49 = vsel %vm822_vm6, %v809_v36, %v817_v45  ;;  %v828_v50 = vsel %vm822_vm6, %v817_v45, %v809_v36  ;;  %v823_v51 = vsel %vm822_vm6, %v807_v40, %v815_v47  ;;  %v827_v52 = vsel %vm822_vm6, %v815_v47, %v807_v40 }
  0xfb   : > { %v844_v0 = vmul.f32 %v2993_v43, %v824_v49  ;;  %v845_v57 = vmul.f32 %v2996_v44, %v828_v50  ;;  %v842_v2 = vmul.f32 %v2993_v43, %v823_v51  ;;  %v843_v58 = vmul.f32 %v2996_v44, %v827_v52  ;;  %v515_v50 = vld [vmem:[%s4106_s6] sm:$0xff] }
  0xfd   : > { %v853_v63 = vpop.permute.xlu1 %852  ;;  %v851_v8 = vpop.permute.xlu0 %850  ;;  %v2179_v9 = vpack.c.bf16 %v845_v57, %v843_v58  ;;  %v2181_v12 = vpack.c.bf16 %v844_v0, %v842_v2  ;;  %v519_v0 = vld [vmem:[%s4106_s6 + $0x20] sm:$0xff] }
  0xff   : > { %2180 = vmatprep.subr.bf16.mxu0 %v2179_v9 }
 0x100   : > { %2182 = vmatpush1.bf16.msra.mxu0 %v2181_v12 }
 0x101   : > { %v861_v16 = vpop.permute.xlu1 %860  ;;  %v859_v18 = vpop.permute.xlu0 %858 }
 0x102   : > { %v868_v1 = vsel %vm866_vm7, %v853_v63, %v861_v16  ;;  %v867_v3 = vsel %vm866_vm7, %v851_v8, %v859_v18  ;;  %v871_v21 = vsel %vm866_vm7, %v859_v18, %v851_v8  ;;  %v872_v7 = vsel %vm866_vm7, %v861_v16, %v853_v63  ;;  %v518_v16 = vld [vmem:[%s4106_s6 + $0x18] sm:$0xff] }
 0x103   : > { %v887_v11 = vmul.f32 %v3015_v14, %v871_v21  ;;  %v889_v13 = vmul.f32 %v3015_v14, %v872_v7  ;;  %v886_v26 = vmul.f32 %v3018_v15, %v867_v3  ;;  %v888_v6 = vmul.f32 %v3018_v15, %v868_v1  ;;  %v517_v3 = vld [vmem:[%s4106_s6 + $0x10] sm:$0xff]  ;;  %v520_v21 = vld [vmem:[%s4106_s6 + $0x28] sm:$0xff] }
 0x105   : > { %v813_v27 = vpop.permute.xlu1 %812  ;;  %v811_v28 = vpop.permute.xlu0 %810  ;;  %v2187_v29 = vpack.c.bf16 %v889_v13, %v887_v11  ;;  %v2189_v5 = vpack.c.bf16 %v888_v6, %v886_v26 }
 0x107   : > { %2188 = vmatprep.subr.bf16.mxu1 %v2187_v29 }
 0x108   : > { %2190 = vmatpush1.bf16.msra.mxu1 %v2189_v5 }
 0x109   : > { %v821_v4 = vpop.permute.xlu1 %820  ;;  %v819_v30 = vpop.permute.xlu0 %818 }
 0x10a   : > { %v826_v31 = vsel %vm822_vm6, %v813_v27, %v821_v4  ;;  %v830_v32 = vsel %vm822_vm6, %v821_v4, %v813_v27  ;;  %v825_v33 = vsel %vm822_vm6, %v811_v28, %v819_v30  ;;  %v829_v34 = vsel %vm822_vm6, %v819_v30, %v811_v28 }
 0x10b   : > { %v848_v35 = vmul.f32 %v2993_v43, %v826_v31  ;;  %v849_v36 = vmul.f32 %v2996_v44, %v830_v32  ;;  %v846_v40 = vmul.f32 %v2993_v43, %v825_v33  ;;  %v847_v41 = vmul.f32 %v2996_v44, %v829_v34 }
 0x10c   : > { %v1071_v4 = vstv %s505_s18 }
 0x10d   : > { %v857_v42 = vpop.permute.xlu1 %856  ;;  %v855_v45 = vpop.permute.xlu0 %854  ;;  %v2183_v47 = vpack.c.bf16 %v849_v36, %v847_v41  ;;  %v2185_v49 = vpack.c.bf16 %v848_v35, %v846_v40 }
 0x10f   : > { %2184 = vmatprep.subr.bf16.mxu0 %v2183_v47 }
 0x110   : > { %2186 = vmatpush1.bf16.msra.mxu0 %v2185_v49 }
 0x111   : > { %v865_v51 = vpop.permute.xlu1 %864  ;;  %v863_v52 = vpop.permute.xlu0 %862 }
 0x112   : > { %v870_v57 = vsel %vm866_vm7, %v857_v42, %v865_v51  ;;  %v874_v2 = vsel %vm866_vm7, %v865_v51, %v857_v42  ;;  %v869_v58 = vsel %vm866_vm7, %v855_v45, %v863_v52  ;;  %v873_v60 = vsel %vm866_vm7, %v863_v52, %v855_v45 }
 0x113   : > { %v892_v63 = vmul.f32 %v3018_v15, %v870_v57  ;;  %v893_v8 = vmul.f32 %v3015_v14, %v874_v2  ;;  %v890_v9 = vmul.f32 %v3018_v15, %v869_v58  ;;  %v891_v12 = vmul.f32 %v3015_v14, %v873_v60  ;;  %978 = vmatmul.mubr.f32.vlgmr.msra.gmra.mrb[0].mxu0 %v515_v50 }
 0x114   : > { %983 = vmatprep.mubr.f32.mxu0 %v519_v0 }
 0x115   : > { %v2191_v18 = vpack.c.bf16 %v893_v8, %v891_v12  ;;  %v2193_v1 = vpack.c.bf16 %v892_v63, %v890_v9  ;;  %v1085_v12 = vld [vmem:[%s4108_s8 + $0x8] sm:$0xff] }
 0x117   : > { %2192 = vmatprep.subr.bf16.mxu1 %v2191_v18  ;;  %984 = vmatmul.mubr.f32.gmra.mrb[2].mxu0 %v518_v16 }
 0x118   : > { %2194 = vmatpush1.bf16.msra.mxu1 %v2193_v1  ;;  %v1354_v1 = vld [vmem:[%s4109_s9] sm:$0xff] }
 0x11b   : > { %2109 = vmatmul.mubr.msk.f32.vlgmr.msra.gmra.mrb[0].mxu1 %vm906_vm8, %v517_v3 }
 0x11c   : > { %1060 = vmatprep.mubr.f32.mxu1 %v4115_v23 }
 0x11f   : > { %2110 = vmatmul.mubr.msk.f32.gmra.mrb[2].mxu1 %vm906_vm8, %v520_v21 }
 0x120   : > { %1436 = vmatprep.mubr.f32.mxu1 %v1085_v12 }
 0x122   : > { %v899_v13 = vpop.permute.xlu0 %898 }
 0x123   : > { %v904_v29 = vpop.permute.xlu1 %903 }
 0x126   : > { %v3150_v2 = vpop.permute.xlu0 %1096 }
 0x127   : > { %v3144_v57 = vpop.permute.xlu1 %1094 }
 0x12a   : > { %v3162_v60 = vpop.permute.xlu0 %1104 }
 0x12b   : > { %v3152_v58 = vpop.permute.xlu1 %1102 }
 0x12c   : > { %v1112_v12 = vsel %vm539_vm0, %v3152_v58, %v3144_v57 }
 0x12e   : > { %v3170_v8 = vpop.permute.xlu0 %1128 }
 0x12f   : > { %v3164_v63 = vpop.permute.xlu1 %1126 }
 0x132   : > { %v3185_v16 = vpop.permute.xlu0 %1136 }
 0x133   : > { %v3172_v9 = vpop.permute.xlu1 %1134 }
 0x136   : > { %v3196_v3 = vpop.permute.xlu0 %1160 }
 0x137   : > { %v3187_v18 = vpop.permute.xlu1 %1158 }
 0x1e6   : > { %v979_v7 = vpop.f32.mrb[0].mxu0 }
 0x1e7   : > { %v981_v11 = vpop.f32.mrb[1].mxu0  ;;  %v980_v6 = vadd.f32 %v979_v7, %v899_v13 }
 0x1e8   : > { %v982_v28 = vadd.f32 %v981_v11, %v899_v13 }
 0x1ea   : > { %v985_v26 = vpop.f32.mrb[2].mxu0 }
 0x1eb   : > { %v987_v27 = vpop.f32.mrb[3].mxu0  ;;  %v986_v32 = vadd.f32 %v985_v26, %v904_v29 }
 0x1ec   : > { %v988_v34 = vadd.f32 %v987_v27, %v904_v29 }
 0x1ee   : > { %v1056_v5 = vpop.f32.mrb[0].mxu1 }
 0x1ef   : > { %v1057_v30 = vadd.f32 %v1056_v5, %v980_v6  ;;  %v1058_v31 = vpop.f32.mrb[1].mxu1 }
 0x1f0   : > { %v1059_v33 = vadd.f32 %v1058_v31, %v982_v28 }
 0x1f1   : > { %vm1067_vm9 = vcmp.ge.f32.partialorder %v1057_v30, 0.0  ;;  %v1072_v35 = vmul.f32 %v1071_v4, %v1057_v30 }
 0x1f2   : > { %v1062_v36 = vpop.f32.mrb[2].mxu1  ;;  %v1073_v50 = vmul.f32 %v1071_v4, %v1059_v33  ;;  %vm1068_vm11 = vcmp.ge.f32.partialorder %v1059_v33, 0.0 }
 0x1f3   : > { %v3074_v40 = vsel %vm1067_vm9, %v1057_v30, %v1072_v35  ;;  %v1063_v41 = vadd.f32 %v1062_v36, %v986_v32  ;;  %v1064_v42 = vpop.f32.mrb[3].mxu1 }
 0x1f4   : > { %v1065_v45 = vadd.f32 %v1064_v42, %v988_v34  ;;  %1090 = vrot.lane.b32.xlu1 %v3074_v40, %s2435_s15  ;;  %v3096_v51 = vsel %vm1068_vm11, %v1059_v33, %v1073_v50 }
 0x1f5   : > { %vm1069_vm10 = vcmp.ge.f32.partialorder %v1063_v41, 0.0  ;;  %v1074_v47 = vmul.f32 %v1071_v4, %v1063_v41 }
 0x1f6   : > { %v1075_v52 = vmul.f32 %v1071_v4, %v1065_v45  ;;  %vm1070_vm12 = vcmp.ge.f32.partialorder %v1065_v45, 0.0 }
 0x1f7   : > { %v3078_v49 = vsel %vm1069_vm10, %v1063_v41, %v1074_v47  ;;  %v1109_v47 = vsel %vm539_vm0, %v3150_v2, %v3162_v60 }
 0x1f8   : > { %1092 = vrot.lane.b32.xlu0 %v3078_v49, %s2435_s15  ;;  %1122 = vrot.lane.b32.xlu1 %v3074_v40, %s2436_s19  ;;  %v3102_v0 = vsel %vm1070_vm12, %v1065_v45, %v1075_v52  ;;  %v1108_v45 = vsel %vm539_vm0, %v3144_v57, %v3152_v58 }
 0x1fc   : > { %1124 = vrot.lane.b32.xlu0 %v3078_v49, %s2436_s19  ;;  %1154 = vrot.lane.b32.xlu1 %v3074_v40, %s2437_s20 }
 0x200   : > { %1156 = vrot.lane.b32.xlu0 %v3078_v49, %s2437_s20  ;;  %1186 = vrot.lane.b32.xlu1 %v3074_v40, %s2438_s23 }
 0x204   : > { %1188 = vrot.lane.b32.xlu0 %v3078_v49, %s2438_s23  ;;  %1226 = vrot.lane.b32.xlu1 %v3074_v40, %s2439_s24 }
 0x208   : > { %1228 = vrot.lane.b32.xlu0 %v3078_v49, %s2439_s24  ;;  %1098 = vrot.lane.b32.xlu1 %v3096_v51, %s2435_s15 }
 0x20c   : > { %1100 = vrot.lane.b32.xlu0 %v3102_v0, %s2435_s15  ;;  %1238 = vrot.lane.b32.xlu1 %v2769_v59, %s2439_s24 }
 0x210   : > { %1240 = vrot.lane.b32.xlu0 %v2766_v56, %s2439_s24  ;;  %1130 = vrot.lane.b32.xlu1 %v3096_v51, %s2436_s19 }
 0x214   : > { %1132 = vrot.lane.b32.xlu0 %v3102_v0, %s2436_s19  ;;  %1162 = vrot.lane.b32.xlu1 %v3096_v51, %s2437_s20 }
 0x218   : > { %1260 = vrot.lane.b32.xlu0 %v3078_v49, %s2440_s25  ;;  %1194 = vrot.lane.b32.xlu1 %v3096_v51, %s2438_s23 }
 0x21c   : > { %1164 = vrot.lane.b32.xlu0 %v3102_v0, %s2437_s20  ;;  %1234 = vrot.lane.b32.xlu1 %v3096_v51, %s2439_s24 }
 0x220   : > { %1264 = vrot.lane.b32.xlu0 %v2749_v48, %s2440_s25  ;;  %1258 = vrot.lane.b32.xlu1 %v3074_v40, %s2440_s25 }
 0x224   : > { %1196 = vrot.lane.b32.xlu0 %v3102_v0, %s2438_s23  ;;  %1266 = vrot.lane.b32.xlu1 %v3096_v51, %s2440_s25 }
 0x228   : > { %1272 = vrot.lane.b32.xlu0 %v2766_v56, %s2440_s25  ;;  %1262 = vrot.lane.b32.xlu1 %v2752_v53, %s2440_s25 }
 0x22c   : > { %1292 = vrot.lane.b32.xlu0 %v3078_v49, %s4113_s26  ;;  %1270 = vrot.lane.b32.xlu1 %v2769_v59, %s2440_s25 }
 0x230   : > { %1296 = vrot.lane.b32.xlu0 %v2749_v48, %s4113_s26  ;;  %1290 = vrot.lane.b32.xlu1 %v3074_v40, %s4113_s26 }
 0x234   : > { %1236 = vrot.lane.b32.xlu0 %v3102_v0, %s2439_s24  ;;  %1298 = vrot.lane.b32.xlu1 %v3096_v51, %s4113_s26 }
 0x238   : > { %1304 = vrot.lane.b32.xlu0 %v2766_v56, %s4113_s26  ;;  %1294 = vrot.lane.b32.xlu1 %v2752_v53, %s4113_s26 }
 0x23c   : > { %1268 = vrot.lane.b32.xlu0 %v3102_v0, %s2440_s25  ;;  %1302 = vrot.lane.b32.xlu1 %v2769_v59, %s4113_s26 }
 0x240   : > { %1324 = vrot.lane.b32.xlu0 %v3078_v49, %s2442_s27  ;;  %1322 = vrot.lane.b32.xlu1 %v3074_v40, %s2442_s27 }
 0x244   : > { %1300 = vrot.lane.b32.xlu0 %v3102_v0, %s4113_s26  ;;  %1330 = vrot.lane.b32.xlu1 %v3096_v51, %s2442_s27  ;;  %s3209_s26 = scalar_lea.vmem %s4104_s4, %s2535_s29 }
 0x245   : > { %v3219_v7 = vld [vmem:[%s3209_s26 + $0x10] sm:$0xff]  ;;  %v3224_v11 = vld [vmem:[%s3209_s26 + $0x8] sm:$0xff]  ;;  %v3229_v13 = vld [vmem:[%s3209_s26 + $0x18] sm:$0xff] }
 0x246   : > { %4151 = vst [vmem:[#allocation12_spill] sm:$0xff] %v3219_v7  ;;  %4152 = vst [vmem:[#allocation13_spill] sm:$0xff] %v3224_v11 }
 0x247   : > { %4153 = vst [vmem:[#allocation14_spill] sm:$0xff] %v3229_v13 }
 0x248   : > { %1328 = vrot.lane.b32.xlu0 %v2749_v48, %s2442_s27  ;;  %1326 = vrot.lane.b32.xlu1 %v2752_v53, %s2442_s27  ;;  %v3198_v48 = vpop.permute.xlu1 %1166  ;;  %v1355_v53 = vld [vmem:[%s4109_s9 + $0x8] sm:$0xff] }
 0x24c   : > { %1332 = vrot.lane.b32.xlu0 %v3102_v0, %s2442_s27  ;;  %1334 = vrot.lane.b32.xlu1 %v2769_v59, %s2442_s27  ;;  %v3211_v59 = vpop.permute.xlu0 %1168  ;;  %v3213_v21 = vpop.permute.xlu1 %1190 }
 0x250   : > { %1336 = vrot.lane.b32.xlu0 %v2766_v56, %s2442_s27  ;;  %1358 = vperm.xlu1 %2389, %v1354_v1   ;;  %v3216_v56 = vld [vmem:[%s3209_s26] sm:$0xff]  ;;  %v3233_v26 = vpop.permute.xlu0 %1192  ;;  %v3235_v6 = vpop.permute.xlu1 %1198  ;;  %v1113_v1 = vsel %vm539_vm0, %v3162_v60, %v3150_v2  ;;  %v1118_v60 = vmul.f32 %v1112_v12, %v2700_v19 }
 0x251   : > { %4150 = vst [vmem:[#allocation11_spill] sm:$0xff] %v3216_v56 }
 0x254   : > { %1363 = vperm.xlu0 %2388, %v1355_v53   ;;  %1549 = vrot.lane.b32.xlu1 %v3216_v56, %s2435_s15  ;;  %v3241_v27 = vpop.permute.xlu0 %1200  ;;  %v3243_v28 = vpop.permute.xlu1 %1230 }
 0x258   : > { %1551 = vrot.lane.b32.xlu0 %v3219_v7, %s2435_s15  ;;  %1557 = vrot.lane.b32.xlu1 %v3224_v11, %s2435_s15  ;;  %v3249_v29 = vpop.permute.xlu0 %1232 }
 0x25c   : > { %1559 = vrot.lane.b32.xlu0 %v3229_v13, %s2435_s15  ;;  %1581 = vrot.lane.b32.xlu1 %v3216_v56, %s2436_s19 }
 0x260   : > { %1583 = vrot.lane.b32.xlu0 %v3219_v7, %s2436_s19  ;;  %1589 = vrot.lane.b32.xlu1 %v3224_v11, %s2436_s19 }
 0x264   : > { %1591 = vrot.lane.b32.xlu0 %v3229_v13, %s2436_s19  ;;  %1613 = vrot.lane.b32.xlu1 %v3216_v56, %s2437_s20 }
 0x266   : > { %v1091_v5 = vpop.permute.xlu1 %1090 }
 0x268   : > { %1615 = vrot.lane.b32.xlu0 %v3219_v7, %s2437_s20  ;;  %1621 = vrot.lane.b32.xlu1 %v3224_v11, %s2437_s20 }
 0x26a   : > { %v1093_v4 = vpop.permute.xlu0 %1092  ;;  %v1123_v30 = vpop.permute.xlu1 %1122 }
 0x26c   : > { %1623 = vrot.lane.b32.xlu0 %v3229_v13, %s2437_s20  ;;  %1645 = vrot.lane.b32.xlu1 %v3216_v56, %s2438_s23 }
 0x26e   : > { %v1125_v31 = vpop.permute.xlu0 %1124  ;;  %v3263_v32 = vpop.permute.xlu1 %1154 }
 0x270   : > { %1647 = vrot.lane.b32.xlu0 %v3219_v7, %s2438_s23  ;;  %1653 = vrot.lane.b32.xlu1 %v3224_v11, %s2438_s23 }
 0x272   : > { %v3269_v33 = vpop.permute.xlu0 %1156  ;;  %v3271_v34 = vpop.permute.xlu1 %1186 }
 0x274   : > { %1655 = vrot.lane.b32.xlu0 %v3229_v13, %s2438_s23  ;;  %1685 = vrot.lane.b32.xlu1 %v3216_v56, %s2439_s24  ;;  %v1121_v56 = vmul.f32 %v1109_v47, %v2691_v17 }
 0x276   : > { %v3277_v35 = vpop.permute.xlu0 %1188  ;;  %v3279_v36 = vpop.permute.xlu1 %1226 }
 0x278   : > { %1687 = vrot.lane.b32.xlu0 %v3219_v7, %s2439_s24  ;;  %1693 = vrot.lane.b32.xlu1 %v3224_v11, %s2439_s24  ;;  %v1119_v11 = vmul.f32 %v1108_v45, %v2691_v17  ;;  %v1120_v45 = vmul.f32 %v1113_v1, %v2700_v19 }
 0x27a   : > { %v3285_v41 = vpop.permute.xlu0 %1228  ;;  %v1099_v42 = vpop.permute.xlu1 %1098  ;;  %v2201_v1 = vpack.c.bf16 %v1120_v45, %v1118_v60 }
 0x27b   : > { %v1106_v50 = vsel %vm539_vm0, %v1091_v5, %v1099_v42  ;;  %v1110_v52 = vsel %vm539_vm0, %v1099_v42, %v1091_v5 }
 0x27c   : > { %1695 = vrot.lane.b32.xlu0 %v3229_v13, %s2439_s24  ;;  %v1114_v57 = vmul.f32 %v1110_v52, %v2700_v19  ;;  %v1115_v58 = vmul.f32 %v1106_v50, %v2691_v17  ;;  %v1141_v50 = vsel %vm583_vm1, %v3170_v8, %v3185_v16  ;;  %v2199_v52 = vpack.c.bf16 %v1121_v56, %v1119_v11 }
 0x27e   : > { %v1101_v53 = vpop.permute.xlu0 %1100  ;;  %v3309_v23 = vpop.permute.xlu1 %1238 }
 0x27f   : > { %v1107_v5 = vsel %vm539_vm0, %v1093_v4, %v1101_v53  ;;  %v1111_v42 = vsel %vm539_vm0, %v1101_v53, %v1093_v4  ;;  %v1140_v4 = vsel %vm583_vm1, %v3164_v63, %v3172_v9  ;;  %v1144_v53 = vsel %vm583_vm1, %v3172_v9, %v3164_v63 }
 0x280   : > { %v1116_v13 = vmul.f32 %v1111_v42, %v2700_v19  ;;  %v1117_v2 = vmul.f32 %v1107_v5, %v2691_v17  ;;  %v1145_v5 = vsel %vm583_vm1, %v3185_v16, %v3170_v8  ;;  %v1151_v11 = vmul.f32 %v1140_v4, %v2759_v55 }
 0x281   : > { %v1153_v42 = vmul.f32 %v1141_v50, %v2759_v55  ;;  %v1150_v16 = vmul.f32 %v1144_v53, %v2756_v54  ;;  %v1173_v4 = vsel %vm627_vm2, %v3196_v3, %v3211_v59  ;;  %v1177_v53 = vsel %vm627_vm2, %v3211_v59, %v3196_v3 }
 0x282   : > { %v2197_v7 = vpack.c.bf16 %v1116_v13, %v1114_v57  ;;  %v3323_v47 = vpop.permute.xlu0 %1240  ;;  %v1131_v14 = vpop.permute.xlu1 %1130  ;;  %v2195_v15 = vpack.c.bf16 %v1117_v2, %v1115_v58  ;;  %v1152_v57 = vmul.f32 %v1145_v5, %v2756_v54 }
 0x283   : > { %v1138_v12 = vsel %vm583_vm1, %v1123_v30, %v1131_v14  ;;  %v1142_v13 = vsel %vm583_vm1, %v1131_v14, %v1123_v30  ;;  %v2207_v50 = vpack.c.bf16 %v1153_v42, %v1151_v11 }
 0x284   : > { %2196 = vmatprep.subr.bf16.mxu1 %v2195_v15  ;;  %v1146_v63 = vmul.f32 %v1142_v13, %v2756_v54  ;;  %v1147_v9 = vmul.f32 %v1138_v12, %v2759_v55  ;;  %v2209_v13 = vpack.c.bf16 %v1152_v57, %v1150_v16  ;;  %v1205_v16 = vsel %vm671_vm3, %v3233_v26, %v3241_v27 }
 0x285   : > { %2198 = vmatpush1.bf16.msra.mxu1 %v2197_v7 }
 0x286   : > { %v1133_v15 = vpop.permute.xlu0 %1132  ;;  %2200 = vmatprep.subr.bf16.mxu1 %v2199_v52  ;;  %v1163_v56 = vpop.permute.xlu1 %1162 }
 0x287   : > { %v1139_v14 = vsel %vm583_vm1, %v1125_v31, %v1133_v15  ;;  %v1143_v7 = vsel %vm583_vm1, %v1133_v15, %v1125_v31  ;;  %v1172_v31 = vsel %vm627_vm2, %v3187_v18, %v3198_v48  ;;  %v1170_v52 = vsel %vm627_vm2, %v3263_v32, %v1163_v56 }
 0x288   : > { %v1148_v30 = vmul.f32 %v1143_v7, %v2756_v54  ;;  %v1149_v8 = vmul.f32 %v1139_v14, %v2759_v55  ;;  %v1174_v12 = vsel %vm627_vm2, %v1163_v56, %v3263_v32  ;;  %v1183_v11 = vmul.f32 %v1172_v31, %v2815_v38 }
 0x289   : > { %2202 = vmatpush1.bf16.msra.mxu1 %v2201_v1  ;;  %v1176_v1 = vsel %vm627_vm2, %v3198_v48, %v3187_v18  ;;  %v1185_v32 = vmul.f32 %v1173_v4, %v2815_v38  ;;  %v1178_v48 = vmul.f32 %v1174_v12, %v2812_v37  ;;  %v1179_v3 = vmul.f32 %v1170_v52, %v2815_v38 }
 0x28a   : > { %v2205_v58 = vpack.c.bf16 %v1148_v30, %v1146_v63  ;;  %v3357_v2 = vpop.permute.xlu0 %1260  ;;  %v1195_v60 = vpop.permute.xlu1 %1194  ;;  %v2203_v45 = vpack.c.bf16 %v1149_v8, %v1147_v9  ;;  %v1182_v14 = vmul.f32 %v1176_v1, %v2812_v37  ;;  %v1184_v7 = vmul.f32 %v1177_v53, %v2812_v37 }
 0x28b   : > { %v2215_v57 = vpack.c.bf16 %v1185_v32, %v1183_v11  ;;  %v1208_v4 = vsel %vm671_vm3, %v3235_v6, %v3213_v21 }
 0x28c   : > { %2204 = vmatprep.subr.bf16.mxu1 %v2203_v45  ;;  %v1206_v45 = vsel %vm671_vm3, %v1195_v60, %v3271_v34  ;;  %v2217_v31 = vpack.c.bf16 %v1184_v7, %v1182_v14  ;;  %v2399_v14 = vld [vmem:[%s2731_s14 + $0x8] sm:$0xff] }
 0x28d   : > { %2206 = vmatpush1.bf16.msra.mxu1 %v2205_v58  ;;  %v1202_v58 = vsel %vm671_vm3, %v3271_v34, %v1195_v60  ;;  %v1217_v34 = vmul.f32 %v1205_v16, %v2865_v25  ;;  %v1223_v7 = vmul.f32 %v2399_v14, %v2887_v39  ;;  %v1220_v16 = vmul.f32 %v3078_v49, %v2894_v46 }
 0x28e   : > { %v1165_v5 = vpop.permute.xlu0 %1164  ;;  %2208 = vmatprep.subr.bf16.mxu1 %v2207_v50  ;;  %v3381_v15 = vpop.permute.xlu1 %1234  ;;  %v1209_v50 = vsel %vm671_vm3, %v3241_v27, %v3233_v26  ;;  %v1211_v26 = vmul.f32 %v1202_v58, %v2865_v25  ;;  %v2401_v58 = vld [vmem:[%s2731_s14] sm:$0xff]  ;;  %v1249_v49 = vsel %vm734_vm4, %v3323_v47, %v3249_v29 }
 0x28f   : > { %v1171_v56 = vsel %vm627_vm2, %v3269_v33, %v1165_v5  ;;  %v1175_v18 = vsel %vm627_vm2, %v1165_v5, %v3269_v33  ;;  %v1204_v33 = vsel %vm671_vm3, %v3213_v21, %v3235_v6  ;;  %v1210_v6 = vmul.f32 %v1206_v45, %v2862_v24 }
 0x290   : > { %v1180_v59 = vmul.f32 %v1175_v18, %v2812_v37  ;;  %v1181_v42 = vmul.f32 %v1171_v56, %v2815_v38  ;;  %v1214_v56 = vmul.f32 %v1208_v4, %v2862_v24  ;;  %v1222_v45 = vmul.f32 %v2401_v58, %v2894_v46 }
 0x291   : > { %2210 = vmatpush1.bf16.msra.mxu1 %v2209_v13  ;;  %v1215_v13 = vmul.f32 %v1204_v33, %v2865_v25 }
 0x292   : > { %v2213_v63 = vpack.c.bf16 %v1180_v59, %v1178_v48  ;;  %v3397_v9 = vpop.permute.xlu0 %1264  ;;  %v3399_v30 = vpop.permute.xlu1 %1258  ;;  %v2211_v8 = vpack.c.bf16 %v1181_v42, %v1179_v3  ;;  %v1221_v48 = vmul.f32 %v3102_v0, %v2887_v39  ;;  %v1219_v42 = vmul.f32 %v3096_v51, %v2887_v39 }
 0x293   : > { %v2223_v18 = vpack.c.bf16 %v1217_v34, %v1215_v13  ;;  %v1246_v34 = vsel %vm734_vm4, %v3381_v15, %v3279_v36 }
 0x294   : > { %2212 = vmatprep.subr.bf16.mxu1 %v2211_v8  ;;  %v2227_v0 = vpack.c.bf16 %v1221_v48, %v1219_v42 }
 0x295   : > { %2214 = vmatpush1.bf16.msra.mxu1 %v2213_v63  ;;  %v2400_v63 = vld [vmem:[%s2731_s14 + $0x18] sm:$0xff] }
 0x296   : > { %v1197_v52 = vpop.permute.xlu0 %1196  ;;  %2216 = vmatprep.subr.bf16.mxu1 %v2215_v57  ;;  %v3423_v12 = vpop.permute.xlu1 %1266  ;;  %v1225_v8 = vmul.f32 %v2400_v63, %v2887_v39  ;;  %v1218_v57 = vmul.f32 %v3074_v40, %v2894_v46  ;;  %v1242_v40 = vsel %vm734_vm4, %v3279_v36, %v3381_v15 }
 0x297   : > { %v1203_v60 = vsel %vm671_vm3, %v3277_v35, %v1197_v52  ;;  %v1207_v21 = vsel %vm671_vm3, %v1197_v52, %v3277_v35  ;;  %v1216_v35 = vmul.f32 %v1209_v50, %v2862_v24 }
 0x298   : > { %v1212_v27 = vmul.f32 %v1207_v21, %v2862_v24  ;;  %v1213_v1 = vmul.f32 %v1203_v60, %v2865_v25  ;;  %v2231_v52 = vpack.c.bf16 %v1225_v8, %v1223_v7  ;;  %v2229_v13 = vpack.c.bf16 %v1220_v16, %v1218_v57 }
 0x299   : > { %2218 = vmatpush1.bf16.msra.mxu1 %v2217_v31  ;;  %v2225_v33 = vpack.c.bf16 %v1216_v35, %v1214_v56  ;;  %v2402_v31 = vld [vmem:[%s2731_s14 + $0x10] sm:$0xff]  ;;  %v1248_v21 = vsel %vm734_vm4, %v3309_v23, %v3243_v28  ;;  %v1274_v7 = vsel %vm778_vm5, %v3399_v30, %v3423_v12 }
 0x29a   : > { %v2221_v53 = vpack.c.bf16 %v1212_v27, %v1210_v6  ;;  %v3437_v5 = vpop.permute.xlu0 %1272  ;;  %v3439_v11 = vpop.permute.xlu1 %1262  ;;  %v2219_v32 = vpack.c.bf16 %v1213_v1, %v1211_v26  ;;  %v1224_v51 = vmul.f32 %v2402_v31, %v2894_v46  ;;  %v1245_v27 = vsel %vm734_vm4, %v3249_v29, %v3323_v47 }
 0x29b   : > { %v1257_v1 = vmul.f32 %v1249_v49, %v2921_v20  ;;  %v1244_v29 = vsel %vm734_vm4, %v3243_v28, %v3309_v23  ;;  %v1255_v47 = vmul.f32 %v1248_v21, %v2921_v20  ;;  %v1278_v23 = vsel %vm778_vm5, %v3423_v12, %v3399_v30 }
 0x29c   : > { %2220 = vmatprep.subr.bf16.mxu1 %v2219_v32  ;;  %v2233_v60 = vpack.c.bf16 %v1224_v51, %v1222_v45  ;;  %v1251_v32 = vmul.f32 %v1246_v34, %v2921_v20  ;;  %v1254_v63 = vmul.f32 %v1244_v29, %v2928_v22  ;;  %v1282_v16 = vmul.f32 %v1274_v7, %v2959_v61 }
 0x29d   : > { %2222 = vmatpush1.bf16.msra.mxu1 %v2221_v53  ;;  %v1250_v53 = vmul.f32 %v1242_v40, %v2928_v22  ;;  %v2239_v8 = vpack.c.bf16 %v1257_v1, %v1255_v47  ;;  %v1281_v58 = vsel %vm778_vm5, %v3437_v5, %v3397_v9  ;;  %v1283_v31 = vmul.f32 %v1278_v23, %v2962_v62 }
 0x29e   : > { %v3445_v3 = vpop.permute.xlu0 %1292  ;;  %2224 = vmatprep.subr.bf16.mxu1 %v2223_v18  ;;  %v1271_v59 = vpop.permute.xlu1 %1270  ;;  %v1256_v18 = vmul.f32 %v1245_v27, %v2928_v22 }
 0x29f   : > { %v1280_v28 = vsel %vm778_vm5, %v1271_v59, %v3439_v11  ;;  %v1276_v30 = vsel %vm778_vm5, %v3439_v11, %v1271_v59  ;;  %v1277_v11 = vsel %vm778_vm5, %v3397_v9, %v3437_v5  ;;  %v1289_v59 = vmul.f32 %v1281_v58, %v2962_v62 }
 0x2a0   : > { %v1287_v51 = vmul.f32 %v1280_v28, %v2962_v62  ;;  %v1286_v49 = vmul.f32 %v1276_v30, %v2959_v61 }
 0x2a1   : > { %2226 = vmatpush1.bf16.msra.mxu1 %v2225_v33  ;;  %v2241_v33 = vpack.c.bf16 %v1256_v18, %v1254_v63 }
 0x2a2   : > { %v3461_v4 = vpop.permute.xlu0 %1296  ;;  %2228 = vmatprep.subr.bf16.mxu1 %v2227_v0  ;;  %v1291_v50 = vpop.permute.xlu1 %1290  ;;  %v2247_v1 = vpack.c.bf16 %v1289_v59, %v1287_v51  ;;  %v1084_v59 = vld [vmem:[%s4108_s8] sm:$0xff] }
 0x2a5   : > { %2230 = vmatpush1.bf16.msra.mxu1 %v2229_v13 }
 0x2a6   : > { %v1237_v6 = vpop.permute.xlu0 %1236  ;;  %v1299_v26 = vpop.permute.xlu1 %1298  ;;  %2232 = vmatprep.subr.bf16.mxu1 %v2231_v52 }
 0x2a7   : > { %v1243_v36 = vsel %vm734_vm4, %v3285_v41, %v1237_v6  ;;  %v1247_v15 = vsel %vm734_vm4, %v1237_v6, %v3285_v41  ;;  %v1306_v21 = vsel %vm822_vm6, %v1291_v50, %v1299_v26  ;;  %v1288_v6 = vmul.f32 %v1277_v11, %v2959_v61 }
 0x2a8   : > { %v1252_v56 = vmul.f32 %v1243_v36, %v2928_v22  ;;  %v1253_v35 = vmul.f32 %v1247_v15, %v2921_v20  ;;  %v1310_v27 = vsel %vm822_vm6, %v1299_v26, %v1291_v50  ;;  %v1314_v36 = vmul.f32 %v1306_v21, %v2993_v43 }
 0x2a9   : > { %2234 = vmatpush1.bf16.msra.mxu1 %v2233_v60  ;;  %v2249_v5 = vpack.c.bf16 %v1288_v6, %v1286_v49 }
 0x2aa   : > { %v2237_v48 = vpack.c.bf16 %v1252_v56, %v1250_v53  ;;  %v1305_v41 = vpop.permute.xlu0 %1304  ;;  %v1295_v42 = vpop.permute.xlu1 %1294  ;;  %v2235_v14 = vpack.c.bf16 %v1253_v35, %v1251_v32  ;;  %v1315_v32 = vmul.f32 %v1310_v27, %v2996_v44 }
 0x2ab   : > { %v1313_v56 = vsel %vm822_vm6, %v1305_v41, %v3461_v4 }
 0x2ac   : > { %2236 = vmatprep.subr.bf16.mxu1 %v2235_v14  ;;  %v1321_v14 = vmul.f32 %v1313_v56, %v2996_v44  ;;  %v1089_v56 = vld [vmem:[%s4108_s8 + $0x28] sm:$0xff] }
 0x2ad   : > { %2238 = vmatpush1.bf16.msra.mxu1 %v2237_v48  ;;  %v1309_v48 = vsel %vm822_vm6, %v3461_v4, %v1305_v41 }
 0x2ae   : > { %v1269_v0 = vpop.permute.xlu0 %1268  ;;  %v1303_v57 = vpop.permute.xlu1 %1302  ;;  %2240 = vmatprep.subr.bf16.mxu1 %v2239_v8 }
 0x2af   : > { %v1275_v12 = vsel %vm778_vm5, %v3357_v2, %v1269_v0  ;;  %v1279_v45 = vsel %vm778_vm5, %v1269_v0, %v3357_v2  ;;  %v1312_v9 = vsel %vm822_vm6, %v1303_v57, %v1295_v42  ;;  %v1308_v35 = vsel %vm822_vm6, %v1295_v42, %v1303_v57  ;;  %v4154_v57 = vld [vmem:[#allocation10_spill] sm:$0xff] }
 0x2b0   : > { %v1284_v52 = vmul.f32 %v1275_v12, %v2959_v61  ;;  %v1285_v13 = vmul.f32 %v1279_v45, %v2962_v62  ;;  %v1319_v29 = vmul.f32 %v1312_v9, %v2996_v44  ;;  %v1318_v23 = vmul.f32 %v1308_v35, %v2993_v43  ;;  %v4155_v45 = vld [vmem:[#allocation9_spill] sm:$0xff] }
 0x2b1   : > { %2242 = vmatpush1.bf16.msra.mxu1 %v2241_v33  ;;  %v1320_v33 = vmul.f32 %v1309_v48, %v2993_v43 }
 0x2b2   : > { %v2245_v40 = vpack.c.bf16 %v1284_v52, %v1282_v16  ;;  %v1325_v2 = vpop.permute.xlu0 %1324  ;;  %v1323_v34 = vpop.permute.xlu1 %1322  ;;  %v2243_v60 = vpack.c.bf16 %v1285_v13, %v1283_v31  ;;  %v2255_v28 = vpack.c.bf16 %v1321_v14, %v1319_v29 }
 0x2b3   : > { %v2257_v0 = vpack.c.bf16 %v1320_v33, %v1318_v23 }
 0x2b4   : > { %2244 = vmatprep.subr.bf16.mxu1 %v2243_v60 }
 0x2b5   : > { %2246 = vmatpush1.bf16.msra.mxu1 %v2245_v40 }
 0x2b6   : > { %v1301_v15 = vpop.permute.xlu0 %1300  ;;  %v1331_v53 = vpop.permute.xlu1 %1330  ;;  %2248 = vmatprep.subr.bf16.mxu1 %v2247_v1 }
 0x2b7   : > { %v1307_v50 = vsel %vm822_vm6, %v3445_v3, %v1301_v15  ;;  %v1311_v26 = vsel %vm822_vm6, %v1301_v15, %v3445_v3  ;;  %v1338_v42 = vsel %vm866_vm7, %v1323_v34, %v1331_v53  ;;  %v1342_v16 = vsel %vm866_vm7, %v1331_v53, %v1323_v34  ;;  %v1088_v34 = vld [vmem:[%s4108_s8 + $0x20] sm:$0xff] }
 0x2b8   : > { %v1316_v47 = vmul.f32 %v1307_v50, %v2993_v43  ;;  %v1317_v18 = vmul.f32 %v1311_v26, %v2996_v44  ;;  %v1346_v58 = vmul.f32 %v1338_v42, %v4154_v57  ;;  %v1347_v31 = vmul.f32 %v1342_v16, %v4155_v45 }
 0x2b9   : > { %2250 = vmatpush1.bf16.msra.mxu1 %v2249_v5  ;;  %v1087_v5 = vld [vmem:[%s4108_s8 + $0x18] sm:$0xff]  ;;  %v4156_v53 = vmov 0.0  }
 0x2ba   : > { %v2253_v7 = vpack.c.bf16 %v1316_v47, %v1314_v36  ;;  %v1329_v63 = vpop.permute.xlu0 %1328  ;;  %v1327_v8 = vpop.permute.xlu1 %1326  ;;  %v2251_v3 = vpack.c.bf16 %v1317_v18, %v1315_v32  ;;  %v1086_v32 = vld [vmem:[%s4108_s8 + $0x10] sm:$0xff] }
 0x2bc   : > { %2252 = vmatprep.subr.bf16.mxu1 %v2251_v3 }
 0x2bd   : > { %2254 = vmatpush1.bf16.msra.mxu1 %v2253_v7 }
 0x2be   : > { %v1333_v4 = vpop.permute.xlu0 %1332  ;;  %v1335_v41 = vpop.permute.xlu1 %1334  ;;  %2256 = vmatprep.subr.bf16.mxu1 %v2255_v28 }
 0x2bf   : > { %v1339_v30 = vsel %vm866_vm7, %v1325_v2, %v1333_v4  ;;  %v1343_v12 = vsel %vm866_vm7, %v1333_v4, %v1325_v2  ;;  %v1340_v13 = vsel %vm866_vm7, %v1327_v8, %v1335_v41  ;;  %v1344_v11 = vsel %vm866_vm7, %v1335_v41, %v1327_v8 }
 0x2c0   : > { %v1348_v51 = vmul.f32 %v1339_v30, %v4154_v57  ;;  %v1349_v52 = vmul.f32 %v1343_v12, %v4155_v45  ;;  %v1350_v60 = vmul.f32 %v1340_v13, %v4154_v57  ;;  %v1351_v27 = vmul.f32 %v1344_v11, %v4155_v45 }
 0x2c1   : > { %2258 = vmatpush1.bf16.msra.mxu1 %v2257_v0 }
 0x2c2   : > { %v2261_v49 = vpack.c.bf16 %v1348_v51, %v1346_v58  ;;  %v1337_v40 = vpop.permute.xlu0 %1336  ;;  %v2259_v2 = vpack.c.bf16 %v1349_v52, %v1347_v31 }
 0x2c3   : > { %v1341_v21 = vsel %vm866_vm7, %v1329_v63, %v1337_v40  ;;  %v1345_v6 = vsel %vm866_vm7, %v1337_v40, %v1329_v63 }
 0x2c4   : > { %v1352_v1 = vmul.f32 %v1341_v21, %v4154_v57  ;;  %v1353_v9 = vmul.f32 %v1345_v6, %v4155_v45  ;;  %1437 = vmatmul.mubr.f32.vlgmr.msra.gmra.mrb[4].mxu1 %v1084_v59  ;;  %2260 = vmatprep.subr.bf16.mxu1 %v2259_v2 }
 0x2c5   : > { %2262 = vmatpush1.bf16.msra.mxu1 %v2261_v49  ;;  %1442 = vmatprep.mubr.f32.mxu1 %v1088_v34 }
 0x2c6   : > { %v2265_v36 = vpack.c.bf16 %v1352_v1, %v1350_v60  ;;  %v2263_v15 = vpack.c.bf16 %v1353_v9, %v1351_v27 }
 0x2c8   : > { %1443 = vmatmul.mubr.f32.gmra.mrb[6].mxu1 %v1087_v5  ;;  %2264 = vmatprep.subr.bf16.mxu1 %v2263_v15 }
 0x2c9   : > { %2266 = vmatpush1.bf16.msra.mxu1 %v2265_v36  ;;  %1513 = vmatprep.mubr.f32.mxu1 %v4156_v53 }
 0x2cc   : > { %2111 = vmatmul.mubr.msk.f32.vlgmr.msra.gmra.mrb[4].mxu1 %vm906_vm8, %v1086_v32 }
 0x2cd   : > { %1519 = vmatprep.mubr.f32.mxu1 %v4156_v53 }
 0x2cf   : > { %v3609_v50 = vpop.permute.xlu1 %1358 }
 0x2d0   : > { %2112 = vmatmul.mubr.msk.f32.gmra.mrb[6].mxu1 %vm906_vm8, %v1089_v56 }
 0x2d1   : > { %1956 = vmatprep.mubr.f32.mxu1 %v4156_v53 }
 0x2d3   : > { %v3611_v26 = vpop.permute.xlu0 %1363  ;;  %v3615_v29 = vpop.permute.xlu1 %1549 }
 0x2d7   : > { %v3613_v35 = vpop.permute.xlu0 %1551  ;;  %v3619_v18 = vpop.permute.xlu1 %1557 }
 0x2d8   : > { %v1567_v14 = vsel %vm539_vm0, %v3619_v18, %v3615_v29 }
 0x2d9   : > { %v3633_v63 = vmul.f32 %v1567_v14, %v2700_v19 }
 0x2db   : > { %v3617_v47 = vpop.permute.xlu0 %1559  ;;  %v3639_v23 = vpop.permute.xlu1 %1581 }
 0x2dc   : > { %v1568_v48 = vsel %vm539_vm0, %v3617_v47, %v3613_v35 }
 0x2dd   : > { %v3630_v7 = vmul.f32 %v1568_v48, %v2700_v19 }
 0x2df   : > { %v3637_v3 = vpop.permute.xlu0 %1583  ;;  %v3643_v28 = vpop.permute.xlu1 %1589 }
 0x2e0   : > { %v1599_v16 = vsel %vm583_vm1, %v3643_v28, %v3639_v23 }
 0x2e1   : > { %v3657_v41 = vmul.f32 %v1599_v16, %v2756_v54 }
 0x2e3   : > { %v3641_v42 = vpop.permute.xlu0 %1591  ;;  %v3663_v30 = vpop.permute.xlu1 %1613 }
 0x2e4   : > { %v1600_v33 = vsel %vm583_vm1, %v3641_v42, %v3637_v3 }
 0x2e5   : > { %v3654_v4 = vmul.f32 %v1600_v33, %v2756_v54 }
 0x2e7   : > { %v3661_v58 = vpop.permute.xlu0 %1615  ;;  %v3667_v31 = vpop.permute.xlu1 %1621 }
 0x2e8   : > { %v1631_v52 = vsel %vm627_vm2, %v3667_v31, %v3663_v30 }
 0x2e9   : > { %v3681_v11 = vmul.f32 %v1631_v52, %v2812_v37 }
 0x2eb   : > { %v3665_v12 = vpop.permute.xlu0 %1623  ;;  %v3687_v40 = vpop.permute.xlu1 %1645 }
 0x2ec   : > { %v1632_v51 = vsel %vm627_vm2, %v3665_v12, %v3661_v58 }
 0x2ed   : > { %v3678_v13 = vmul.f32 %v1632_v51, %v2812_v37 }
 0x2ef   : > { %v3685_v49 = vpop.permute.xlu0 %1647  ;;  %v3691_v34 = vpop.permute.xlu1 %1653 }
 0x2f0   : > { %v1663_v21 = vsel %vm671_vm3, %v3691_v34, %v3687_v40 }
 0x2f1   : > { %v3705_v27 = vmul.f32 %v1663_v21, %v2862_v24 }
 0x2f3   : > { %v3689_v2 = vpop.permute.xlu0 %1655  ;;  %v1686_v5 = vpop.permute.xlu1 %1685 }
 0x2f4   : > { %v1664_v60 = vsel %vm671_vm3, %v3689_v2, %v3685_v49 }
 0x2f5   : > { %v3702_v6 = vmul.f32 %v1664_v60, %v2862_v24 }
 0x2f7   : > { %v1688_v9 = vpop.permute.xlu0 %1687  ;;  %v1694_v15 = vpop.permute.xlu1 %1693 }
 0x2f8   : > { %v1699_v56 = vsel %vm734_vm4, %v1686_v5, %v1694_v15  ;;  %v1703_v48 = vsel %vm734_vm4, %v1694_v15, %v1686_v5 }
 0x2f9   : > { %v3721_v33 = vmul.f32 %v1699_v56, %v2928_v22  ;;  %v3727_v51 = vmul.f32 %v1703_v48, %v2921_v20 }
 0x2fb   : > { %v1696_v36 = vpop.permute.xlu0 %1695  ;;  %4158 = vst [vmem:[#allocation16_spill] sm:$0xff] %v3721_v33  ;;  %4159 = vst [vmem:[#allocation17_spill] sm:$0xff] %v3727_v51 }
 0x2fc   : > { %v1700_v53 = vsel %vm734_vm4, %v1688_v9, %v1696_v36  ;;  %v1704_v32 = vsel %vm734_vm4, %v1696_v36, %v1688_v9  ;;  %v1530_v9 = vstv %s2108_s13 }
 0x2fd   : > { %v3718_v14 = vmul.f32 %v1700_v53, %v2928_v22  ;;  %v3724_v16 = vmul.f32 %v1704_v32, %v2921_v20 }
 0x2ff   : > { %4157 = vst [vmem:[#allocation15_spill] sm:$0xff] %v3718_v14 }
 0x39f   : > { %v1515_v21 = vpop.f32.mrb[4].mxu1 }
 0x3a0   : > { %v2347_v5 = vadd.f32 %v1515_v21, %v3609_v50  ;;  %v1517_v36 = vpop.f32.mrb[5].mxu1 }
 0x3a2   : > { %vm1526_vm13 = vcmp.ge.f32.partialorder %v2347_v5, 0.0  ;;  %v1531_v15 = vmul.f32 %v2347_v5, %v1530_v9 }
 0x3a3   : > { %v1521_v53 = vpop.f32.mrb[6].mxu1 }
 0x3a4   : > { %v1535_v32 = vsel %vm1526_vm13, %v2347_v5, %v1531_v15  ;;  %v2349_v56 = vadd.f32 %v1521_v53, %v3611_v26  ;;  %v1523_v48 = vpop.f32.mrb[7].mxu1  ;;  %v2348_v15 = vadd.f32 %v1517_v36, %v3609_v50  ;;  %v4162_v36 = vld [vmem:[#allocation11_spill] sm:$0xff] }
 0x3a5   : > { %1545 = vrot.lane.b32.xlu1 %v1535_v32, %s2435_s15  ;;  %v3739_v60 = vmul.f32 %v1535_v32, %v2894_v46  ;;  %v2350_v53 = vadd.f32 %v1523_v48, %v3611_v26  ;;  %v4160_v26 = vld [vmem:[#allocation12_spill] sm:$0xff]  ;;  %v4164_v48 = vld [vmem:[#allocation13_spill] sm:$0xff] }
 0x3a6   : > { %vm1528_vm14 = vcmp.ge.f32.partialorder %v2349_v56, 0.0  ;;  %v1533_v52 = vmul.f32 %v2349_v56, %v1530_v9  ;;  %vm1527_vm15 = vcmp.ge.f32.partialorder %v2348_v15, 0.0 }
 0x3a7   : > { %v1534_v5 = vmul.f32 %v2350_v53, %v1530_v9  ;;  %vm1529_vm9 = vcmp.ge.f32.partialorder %v2350_v53, 0.0 }
 0x3a8   : > { %v1537_v1 = vsel %vm1528_vm14, %v2349_v56, %v1533_v52  ;;  %v1532_v52 = vmul.f32 %v2348_v15, %v1530_v9  ;;  %v4161_v9 = vld [vmem:[#allocation14_spill] sm:$0xff] }
 0x3a9   : > { %1547 = vrot.lane.b32.xlu0 %v1537_v1, %s2435_s15  ;;  %1577 = vrot.lane.b32.xlu1 %v1535_v32, %s2436_s19  ;;  %v3742_v21 = vmul.f32 %v1537_v1, %v2894_v46  ;;  %v3759_v50 = vsel %vm1529_vm9, %v2350_v53, %v1534_v5  ;;  %v1809_v5 = vld [vmem:[%s4111_s11] sm:$0x7] }
 0x3aa   : > { %v3754_v56 = vsel %vm1527_vm15, %v2348_v15, %v1532_v52 }
 0x3ad   : > { %1579 = vrot.lane.b32.xlu0 %v1537_v1, %s2436_s19  ;;  %1609 = vrot.lane.b32.xlu1 %v1535_v32, %s2437_s20 }
 0x3b1   : > { %1611 = vrot.lane.b32.xlu0 %v1537_v1, %s2437_s20  ;;  %1641 = vrot.lane.b32.xlu1 %v1535_v32, %s2438_s23 }
 0x3b5   : > { %1643 = vrot.lane.b32.xlu0 %v1537_v1, %s2438_s23  ;;  %1681 = vrot.lane.b32.xlu1 %v1535_v32, %s2439_s24 }
 0x3b9   : > { %1683 = vrot.lane.b32.xlu0 %v1537_v1, %s2439_s24  ;;  %1553 = vrot.lane.b32.xlu1 %v3754_v56, %s2435_s15 }
 0x3bd   : > { %1555 = vrot.lane.b32.xlu0 %v3759_v50, %s2435_s15  ;;  %1713 = vrot.lane.b32.xlu1 %v1535_v32, %s2440_s25  ;;  %s4163_s15 = smov 112  }
 0x3c1   : > { %1715 = vrot.lane.b32.xlu0 %v1537_v1, %s2440_s25  ;;  %1585 = vrot.lane.b32.xlu1 %v3754_v56, %s2436_s19 }
 0x3c5   : > { %1587 = vrot.lane.b32.xlu0 %v3759_v50, %s2436_s19  ;;  %1617 = vrot.lane.b32.xlu1 %v3754_v56, %s2437_s20 }
 0x3c9   : > { %1719 = vrot.lane.b32.xlu0 %v4160_v26, %s2440_s25  ;;  %1649 = vrot.lane.b32.xlu1 %v3754_v56, %s2438_s23 }
 0x3cd   : > { %1619 = vrot.lane.b32.xlu0 %v3759_v50, %s2437_s20  ;;  %1689 = vrot.lane.b32.xlu1 %v3754_v56, %s2439_s24 }
 0x3d1   : > { %1727 = vrot.lane.b32.xlu0 %v4161_v9, %s2440_s25  ;;  %1721 = vrot.lane.b32.xlu1 %v3754_v56, %s2440_s25 }
 0x3d5   : > { %1651 = vrot.lane.b32.xlu0 %v3759_v50, %s2438_s23  ;;  %1717 = vrot.lane.b32.xlu1 %v4162_v36, %s2440_s25 }
 0x3d9   : > { %1747 = vrot.lane.b32.xlu0 %v1537_v1, %s4163_s15  ;;  %1725 = vrot.lane.b32.xlu1 %v4164_v48, %s2440_s25 }
 0x3dd   : > { %1779 = vrot.lane.b32.xlu0 %v1537_v1, %s2442_s27  ;;  %1745 = vrot.lane.b32.xlu1 %v1535_v32, %s4163_s15  ;;  %v3814_v1 = vld [vmem:[%s4110_s10] sm:$0x77] }
 0x3de   : > { %4165 = vst [vmem:[#allocation12_spill] sm:$0xff] %v3814_v1 }
 0x3e1   : > { %1751 = vrot.lane.b32.xlu0 %v4160_v26, %s4163_s15  ;;  %1753 = vrot.lane.b32.xlu1 %v3754_v56, %s4163_s15 }
 0x3e5   : > { %1691 = vrot.lane.b32.xlu0 %v3759_v50, %s2439_s24  ;;  %1777 = vrot.lane.b32.xlu1 %v1535_v32, %s2442_s27  ;;  %v1817_v32 = vcombine.high %v3814_v1, %v3814_v1 }
 0x3e7   : > { %1885 = vmatprep.mubr.f32.mxu0 %v1817_v32 }
 0x3e9   : > { %1759 = vrot.lane.b32.xlu0 %v4161_v9, %s4163_s15  ;;  %1785 = vrot.lane.b32.xlu1 %v3754_v56, %s2442_s27 }
 0x3ed   : > { %1723 = vrot.lane.b32.xlu0 %v3759_v50, %s2440_s25  ;;  %1749 = vrot.lane.b32.xlu1 %v4162_v36, %s4163_s15 }
 0x3f1   : > { %1783 = vrot.lane.b32.xlu0 %v4160_v26, %s2442_s27  ;;  %1757 = vrot.lane.b32.xlu1 %v4164_v48, %s4163_s15 }
 0x3f5   : > { %1755 = vrot.lane.b32.xlu0 %v3759_v50, %s4163_s15  ;;  %1781 = vrot.lane.b32.xlu1 %v4162_v36, %s2442_s27 }
 0x3f9   : > { %1787 = vrot.lane.b32.xlu0 %v3759_v50, %s2442_s27  ;;  %1789 = vrot.lane.b32.xlu1 %v4164_v48, %s2442_s27 }
 0x3fd   : > { %1791 = vrot.lane.b32.xlu0 %v4161_v9, %s2442_s27  ;;  %1812 = vperm.xlu1 %2389, %v1809_v5   ;;  %v1564_v9 = vsel %vm539_vm0, %v3613_v35, %v3617_v47  ;;  %v1563_v5 = vsel %vm539_vm0, %v3615_v29, %v3619_v18  ;;  %s2122_s27 = sshll.u32 %s4184_s22, 3 }
 0x3fe   : > { %v1576_v33 = vmul.f32 %v1564_v9, %v2691_v17  ;;  %v1574_v14 = vmul.f32 %v1563_v5, %v2691_v17  ;;  %v1596_v5 = vsel %vm583_vm1, %v3637_v3, %v3641_v42  ;;  %s487_s18 = scalar_lea.vmem %s4112_s12, %s2122_s27 }
 0x417   : > { %v1546_v15 = vpop.permute.xlu1 %1545 }
 0x41b   : > { %v1548_v52 = vpop.permute.xlu0 %1547  ;;  %v1578_v53 = vpop.permute.xlu1 %1577 }
 0x41f   : > { %v1580_v26 = vpop.permute.xlu0 %1579  ;;  %v1610_v36 = vpop.permute.xlu1 %1609 }
 0x423   : > { %v1612_v32 = vpop.permute.xlu0 %1611  ;;  %v3831_v59 = vpop.permute.xlu1 %1641 }
 0x427   : > { %v3833_v0 = vpop.permute.xlu0 %1643  ;;  %v3835_v8 = vpop.permute.xlu1 %1681 }
 0x42b   : > { %v3837_v48 = vpop.permute.xlu0 %1683  ;;  %v1554_v1 = vpop.permute.xlu1 %1553 }
 0x42c   : > { %v1561_v45 = vsel %vm539_vm0, %v1546_v15, %v1554_v1  ;;  %v1565_v57 = vsel %vm539_vm0, %v1554_v1, %v1546_v15 }
 0x42d   : > { %v1569_v29 = vmul.f32 %v1565_v57, %v2700_v19  ;;  %v1570_v18 = vmul.f32 %v1561_v45, %v2691_v17  ;;  %v2271_v57 = vpack.c.bf16 %v1576_v33, %v1574_v14 }
 0x42f   : > { %v1556_v44 = vpop.permute.xlu0 %1555  ;;  %v3851_v43 = vpop.permute.xlu1 %1713 }
 0x430   : > { %v1562_v35 = vsel %vm539_vm0, %v1548_v52, %v1556_v44  ;;  %v1566_v47 = vsel %vm539_vm0, %v1556_v44, %v1548_v52  ;;  %v1595_v44 = vsel %vm583_vm1, %v3639_v23, %v3643_v28  ;;  %v1608_v52 = vmul.f32 %v1596_v5, %v2759_v55 }
 0x431   : > { %v1571_v62 = vmul.f32 %v1566_v47, %v2700_v19  ;;  %v1572_v1 = vmul.f32 %v1562_v35, %v2691_v17  ;;  %v1606_v3 = vmul.f32 %v1595_v44, %v2759_v55 }
 0x433   : > { %v2269_v15 = vpack.c.bf16 %v1571_v62, %v1569_v29  ;;  %v3863_v61 = vpop.permute.xlu0 %1715  ;;  %v1586_v9 = vpop.permute.xlu1 %1585  ;;  %v2267_v51 = vpack.c.bf16 %v1572_v1, %v1570_v18 }
 0x434   : > { %v1593_v17 = vsel %vm583_vm1, %v1578_v53, %v1586_v9  ;;  %v1597_v19 = vsel %vm583_vm1, %v1586_v9, %v1578_v53  ;;  %v4166_v53 = vpack.c.bf16 %v3630_v7, %v3633_v63 }
 0x435   : > { %2268 = vmatprep.subr.bf16.mxu0 %v2267_v51  ;;  %v1601_v28 = vmul.f32 %v1597_v19, %v2756_v54  ;;  %v1602_v14 = vmul.f32 %v1593_v17, %v2759_v55 }
 0x436   : > { %2270 = vmatpush1.bf16.msra.mxu0 %v2269_v15 }
 0x437   : > { %v1588_v62 = vpop.permute.xlu0 %1587  ;;  %2272 = vmatprep.subr.bf16.mxu0 %v2271_v57  ;;  %v1618_v45 = vpop.permute.xlu1 %1617  ;;  %v4167_v57 = vpack.c.bf16 %v3654_v4, %v3657_v41 }
 0x438   : > { %v1594_v42 = vsel %vm583_vm1, %v1580_v26, %v1588_v62  ;;  %v1598_v23 = vsel %vm583_vm1, %v1588_v62, %v1580_v26  ;;  %v1628_v26 = vsel %vm627_vm2, %v3661_v58, %v3665_v12  ;;  %v1625_v7 = vsel %vm627_vm2, %v1610_v36, %v1618_v45 }
 0x439   : > { %v1603_v33 = vmul.f32 %v1598_v23, %v2756_v54  ;;  %v1604_v51 = vmul.f32 %v1594_v42, %v2759_v55  ;;  %v1627_v54 = vsel %vm627_vm2, %v3663_v30, %v3667_v31  ;;  %v2279_v55 = vpack.c.bf16 %v1608_v52, %v1606_v3 }
 0x43a   : > { %2274 = vmatpush1.bf16.msra.mxu0 %v4166_v53  ;;  %v1629_v63 = vsel %vm627_vm2, %v1618_v45, %v1610_v36  ;;  %v1640_v9 = vmul.f32 %v1628_v26, %v2815_v38  ;;  %v1638_v58 = vmul.f32 %v1627_v54, %v2815_v38  ;;  %v1634_v5 = vmul.f32 %v1625_v7, %v2815_v38  ;;  %v2404_v26 = vld [vmem:[%s3209_s26 + $0x18] sm:$0xff] }
 0x43b   : > { %v2277_v35 = vpack.c.bf16 %v1603_v33, %v1601_v28  ;;  %v3890_v47 = vpop.permute.xlu0 %1719  ;;  %v1650_v29 = vpop.permute.xlu1 %1649  ;;  %v2275_v18 = vpack.c.bf16 %v1604_v51, %v1602_v14  ;;  %v1633_v31 = vmul.f32 %v1629_v63, %v2812_v37  ;;  %v4168_v14 = vpack.c.bf16 %v3678_v13, %v3681_v11  ;;  %v2403_v11 = vld [vmem:[%s3209_s26 + $0x8] sm:$0xff] }
 0x43c   : > { %v1657_v4 = vsel %vm671_vm3, %v3831_v59, %v1650_v29  ;;  %v1661_v41 = vsel %vm671_vm3, %v1650_v29, %v3831_v59  ;;  %v1676_v29 = vmul.f32 %v3759_v50, %v2887_v39  ;;  %v1674_v13 = vmul.f32 %v3754_v56, %v2887_v39  ;;  %v2405_v50 = vld [vmem:[%s3209_s26] sm:$0xff] }
 0x43d   : > { %2276 = vmatprep.subr.bf16.mxu0 %v2275_v18  ;;  %v1665_v42 = vmul.f32 %v1661_v41, %v2862_v24  ;;  %v1666_v59 = vmul.f32 %v1657_v4, %v2865_v25  ;;  %v1678_v18 = vmul.f32 %v2403_v11, %v2887_v39  ;;  %v1680_v54 = vmul.f32 %v2404_v26, %v2887_v39  ;;  %v4171_v4 = vld [vmem:[#allocation17_spill] sm:$0xff] }
 0x43e   : > { %2278 = vmatpush1.bf16.msra.mxu0 %v2277_v35  ;;  %v4169_v7 = vpack.c.bf16 %v3702_v6, %v3705_v27  ;;  %v1677_v63 = vmul.f32 %v2405_v50, %v2894_v46  ;;  %v4170_v27 = vpack.c.bf16 %v3742_v21, %v3739_v60  ;;  %v4172_v41 = vpack.c.bf16 %v3724_v16, %v4171_v4 }
 0x43f   : > { %v1620_v1 = vpop.permute.xlu0 %1619  ;;  %2280 = vmatprep.subr.bf16.mxu0 %v2279_v55  ;;  %v1690_v15 = vpop.permute.xlu1 %1689  ;;  %v2299_v55 = vpack.c.bf16 %v1676_v29, %v1674_v13 }
 0x440   : > { %v1626_v12 = vsel %vm627_vm2, %v1612_v32, %v1620_v1  ;;  %v1630_v30 = vsel %vm627_vm2, %v1620_v1, %v1612_v32  ;;  %v1660_v32 = vsel %vm671_vm3, %v3685_v49, %v3689_v2  ;;  %v2406_v1 = vld [vmem:[%s3209_s26 + $0x10] sm:$0xff]  ;;  %v1697_v39 = vsel %vm734_vm4, %v3835_v8, %v1690_v15 }
 0x441   : > { %v1635_v36 = vmul.f32 %v1630_v30, %v2812_v37  ;;  %v1636_v44 = vmul.f32 %v1626_v12, %v2815_v38  ;;  %v1659_v37 = vsel %vm671_vm3, %v3687_v40, %v3691_v34  ;;  %v2287_v38 = vpack.c.bf16 %v1640_v9, %v1638_v58 }
 0x442   : > { %2282 = vmatpush1.bf16.msra.mxu0 %v4167_v57  ;;  %v1672_v49 = vmul.f32 %v1660_v32, %v2865_v25  ;;  %v1670_v2 = vmul.f32 %v1659_v37, %v2865_v25  ;;  %v1679_v9 = vmul.f32 %v2406_v1, %v2894_v46  ;;  %v2303_v12 = vpack.c.bf16 %v1680_v54, %v1678_v18  ;;  %v4178_v54 = vld [vmem:[#allocation7_spill] sm:$0xff] }
 0x443   : > { %v2285_v17 = vpack.c.bf16 %v1635_v36, %v1633_v31  ;;  %v3917_v19 = vpop.permute.xlu0 %1727  ;;  %v3919_v62 = vpop.permute.xlu1 %1721  ;;  %v2283_v45 = vpack.c.bf16 %v1636_v44, %v1634_v5  ;;  %v1701_v6 = vsel %vm734_vm4, %v1690_v15, %v3835_v8  ;;  %v1705_v44 = vmul.f32 %v1697_v39, %v2928_v22 }
 0x444   : > { %v2295_v35 = vpack.c.bf16 %v1672_v49, %v1670_v2  ;;  %v2305_v30 = vpack.c.bf16 %v1679_v9, %v1677_v63  ;;  %v1706_v8 = vmul.f32 %v1701_v6, %v2921_v20  ;;  %v1729_v32 = vsel %vm778_vm5, %v3851_v43, %v3919_v62 }
 0x445   : > { %2284 = vmatprep.subr.bf16.mxu0 %v2283_v45 }
 0x446   : > { %2286 = vmatpush1.bf16.msra.mxu0 %v2285_v17 }
 0x447   : > { %v1652_v52 = vpop.permute.xlu0 %1651  ;;  %2288 = vmatprep.subr.bf16.mxu0 %v2287_v38  ;;  %v3935_v3 = vpop.permute.xlu1 %1717 }
 0x448   : > { %v1658_v40 = vsel %vm671_vm3, %v3833_v0, %v1652_v52  ;;  %v1662_v34 = vsel %vm671_vm3, %v1652_v52, %v3833_v0  ;;  %v4173_v52 = vld [vmem:[#allocation5_spill] sm:$0xff] }
 0x449   : > { %v1667_v23 = vmul.f32 %v1662_v34, %v2862_v24  ;;  %v1668_v28 = vmul.f32 %v1658_v40, %v2865_v25  ;;  %v1737_v49 = vmul.f32 %v1729_v32, %v4173_v52  ;;  %v4174_v40 = vld [vmem:[#allocation6_spill] sm:$0xff] }
 0x44a   : > { %2290 = vmatpush1.bf16.msra.mxu0 %v4168_v14 }
 0x44b   : > { %v2293_v33 = vpack.c.bf16 %v1667_v23, %v1665_v42  ;;  %v3952_v51 = vpop.permute.xlu0 %1747  ;;  %v1726_v53 = vpop.permute.xlu1 %1725  ;;  %v2291_v0 = vpack.c.bf16 %v1668_v28, %v1666_v59  ;;  %v4175_v23 = vld [vmem:[#allocation15_spill] sm:$0xff]  ;;  %v4176_v28 = vld [vmem:[#allocation16_spill] sm:$0xff] }
 0x44c   : > { %v4177_v14 = vpack.c.bf16 %v4175_v23, %v4176_v28 }
 0x44d   : > { %2292 = vmatprep.subr.bf16.mxu0 %v2291_v0 }
 0x44e   : > { %2294 = vmatpush1.bf16.msra.mxu0 %v2293_v33 }
 0x44f   : > { %v3956_v24 = vpop.permute.xlu0 %1779  ;;  %2296 = vmatprep.subr.bf16.mxu0 %v2295_v35  ;;  %v1746_v25 = vpop.permute.xlu1 %1745 }
 0x452   : > { %2298 = vmatpush1.bf16.msra.mxu0 %v4169_v7  ;;  %v4179_v7 = vld [vmem:[#allocation8_spill] sm:$0xff] }
 0x453   : > { %v3971_v58 = vpop.permute.xlu0 %1751  ;;  %2300 = vmatprep.subr.bf16.mxu0 %v2299_v55  ;;  %v1754_v56 = vpop.permute.xlu1 %1753 }
 0x454   : > { %v1761_v13 = vsel %vm822_vm6, %v1746_v25, %v1754_v56  ;;  %v1765_v11 = vsel %vm822_vm6, %v1754_v56, %v1746_v25 }
 0x455   : > { %v1769_v55 = vmul.f32 %v1761_v13, %v4178_v54  ;;  %v1770_v50 = vmul.f32 %v1765_v11, %v4179_v7 }
 0x456   : > { %2302 = vmatpush1.bf16.msra.mxu0 %v4170_v27 }
 0x457   : > { %v1692_v31 = vpop.permute.xlu0 %1691  ;;  %v1778_v46 = vpop.permute.xlu1 %1777  ;;  %2304 = vmatprep.subr.bf16.mxu0 %v2303_v12 }
 0x458   : > { %v1698_v5 = vsel %vm734_vm4, %v3837_v48, %v1692_v31  ;;  %v1702_v36 = vsel %vm734_vm4, %v1692_v31, %v3837_v48  ;;  %v1733_v48 = vsel %vm778_vm5, %v3919_v62, %v3851_v43  ;;  %v1731_v43 = vsel %vm778_vm5, %v3935_v3, %v1726_v53 }
 0x459   : > { %v1707_v15 = vmul.f32 %v1698_v5, %v2928_v22  ;;  %v1708_v60 = vmul.f32 %v1702_v36, %v2921_v20  ;;  %v1735_v20 = vsel %vm778_vm5, %v1726_v53, %v3935_v3  ;;  %v1736_v22 = vsel %vm778_vm5, %v3917_v19, %v3890_v47 }
 0x45a   : > { %2306 = vmatpush1.bf16.msra.mxu0 %v2305_v30  ;;  %v1738_v34 = vmul.f32 %v1733_v48, %v4174_v40  ;;  %v1742_v42 = vmul.f32 %v1735_v20, %v4174_v40  ;;  %v1732_v3 = vsel %vm778_vm5, %v3890_v47, %v3917_v19  ;;  %v1744_v33 = vmul.f32 %v1736_v22, %v4174_v40 }
 0x45b   : > { %v2309_v21 = vpack.c.bf16 %v1707_v15, %v1705_v44  ;;  %v1760_v57 = vpop.permute.xlu0 %1759  ;;  %v1786_v17 = vpop.permute.xlu1 %1785  ;;  %v2307_v45 = vpack.c.bf16 %v1708_v60, %v1706_v8  ;;  %v1743_v47 = vmul.f32 %v1732_v3, %v4173_v52  ;;  %v4180_v60 = vld [vmem:[#allocation10_spill] sm:$0xff] }
 0x45c   : > { %v2319_v19 = vpack.c.bf16 %v1744_v33, %v1742_v42  ;;  %v1768_v25 = vsel %vm822_vm6, %v1760_v57, %v3971_v58  ;;  %v1793_v9 = vsel %vm866_vm7, %v1778_v46, %v1786_v17  ;;  %v1797_v31 = vsel %vm866_vm7, %v1786_v17, %v1778_v46  ;;  %v4181_v17 = vld [vmem:[#allocation9_spill] sm:$0xff] }
 0x45d   : > { %2308 = vmatprep.subr.bf16.mxu0 %v2307_v45  ;;  %v1764_v5 = vsel %vm822_vm6, %v3971_v58, %v1760_v57  ;;  %v1776_v36 = vmul.f32 %v1768_v25, %v4179_v7  ;;  %v1802_v58 = vmul.f32 %v1797_v31, %v4181_v17 }
 0x45e   : > { %2310 = vmatpush1.bf16.msra.mxu0 %v2309_v21  ;;  %v1801_v21 = vmul.f32 %v1793_v9, %v4180_v60  ;;  %v1775_v22 = vmul.f32 %v1764_v5, %v4178_v54 }
 0x45f   : > { %v1724_v37 = vpop.permute.xlu0 %1723  ;;  %v1750_v38 = vpop.permute.xlu1 %1749  ;;  %2312 = vmatprep.subr.bf16.mxu0 %v4172_v41 }
 0x460   : > { %v1730_v62 = vsel %vm778_vm5, %v3863_v61, %v1724_v37  ;;  %v1734_v2 = vsel %vm778_vm5, %v1724_v37, %v3863_v61  ;;  %v1741_v61 = vmul.f32 %v1731_v43, %v4173_v52 }
 0x461   : > { %v1739_v16 = vmul.f32 %v1730_v62, %v4173_v52  ;;  %v1740_v59 = vmul.f32 %v1734_v2, %v4174_v40 }
 0x462   : > { %2314 = vmatpush1.bf16.msra.mxu0 %v4177_v14  ;;  %v2321_v26 = vpack.c.bf16 %v1743_v47, %v1741_v61 }
 0x463   : > { %v2317_v53 = vpack.c.bf16 %v1739_v16, %v1737_v49  ;;  %v1784_v0 = vpop.permute.xlu0 %1783  ;;  %v1758_v35 = vpop.permute.xlu1 %1757  ;;  %v2315_v29 = vpack.c.bf16 %v1740_v59, %v1738_v34  ;;  %v4182_v59 = vld [vmem:[#allocation12_spill] sm:$0xff] }
 0x464   : > { %v1767_v18 = vsel %vm822_vm6, %v1758_v35, %v1750_v38  ;;  %v1763_v39 = vsel %vm822_vm6, %v1750_v38, %v1758_v35 }
 0x465   : > { %2316 = vmatprep.subr.bf16.mxu0 %v2315_v29  ;;  %v1774_v6 = vmul.f32 %v1767_v18, %v4179_v7  ;;  %v1773_v45 = vmul.f32 %v1763_v39, %v4178_v54 }
 0x466   : > { %2318 = vmatpush1.bf16.msra.mxu0 %v2317_v53 }
 0x467   : > { %v1756_v63 = vpop.permute.xlu0 %1755  ;;  %v1782_v1 = vpop.permute.xlu1 %1781  ;;  %2320 = vmatprep.subr.bf16.mxu0 %v2319_v19  ;;  %v2327_v20 = vpack.c.bf16 %v1776_v36, %v1774_v6  ;;  %v2329_v52 = vpack.c.bf16 %v1775_v22, %v1773_v45 }
 0x468   : > { %v1762_v56 = vsel %vm822_vm6, %v3952_v51, %v1756_v63  ;;  %v1766_v12 = vsel %vm822_vm6, %v1756_v63, %v3952_v51 }
 0x469   : > { %v1771_v27 = vmul.f32 %v1762_v56, %v4178_v54  ;;  %v1772_v30 = vmul.f32 %v1766_v12, %v4179_v7 }
 0x46a   : > { %2322 = vmatpush1.bf16.msra.mxu0 %v2321_v26 }
 0x46b   : > { %v2325_v51 = vpack.c.bf16 %v1771_v27, %v1769_v55  ;;  %v1788_v44 = vpop.permute.xlu0 %1787  ;;  %v1790_v8 = vpop.permute.xlu1 %1789  ;;  %v2323_v15 = vpack.c.bf16 %v1772_v30, %v1770_v50 }
 0x46c   : > { %v1794_v32 = vsel %vm866_vm7, %v3956_v24, %v1788_v44  ;;  %v1798_v46 = vsel %vm866_vm7, %v1788_v44, %v3956_v24  ;;  %v1795_v37 = vsel %vm866_vm7, %v1782_v1, %v1790_v8  ;;  %v1799_v38 = vsel %vm866_vm7, %v1790_v8, %v1782_v1 }
 0x46d   : > { %v1803_v57 = vmul.f32 %v1794_v32, %v4180_v60  ;;  %v1804_v48 = vmul.f32 %v1798_v46, %v4181_v17  ;;  %2324 = vmatprep.subr.bf16.mxu0 %v2323_v15  ;;  %v1805_v62 = vmul.f32 %v1795_v37, %v4180_v60  ;;  %v1806_v2 = vmul.f32 %v1799_v38, %v4181_v17 }
 0x46e   : > { %2326 = vmatpush1.bf16.msra.mxu0 %v2325_v51 }
 0x46f   : > { %v2333_v4 = vpack.c.bf16 %v1803_v57, %v1801_v21  ;;  %v1792_v41 = vpop.permute.xlu0 %1791  ;;  %2328 = vmatprep.subr.bf16.mxu0 %v2327_v20  ;;  %v2331_v24 = vpack.c.bf16 %v1804_v48, %v1802_v58 }
 0x470   : > { %v1796_v49 = vsel %vm866_vm7, %v1784_v0, %v1792_v41  ;;  %v1800_v43 = vsel %vm866_vm7, %v1792_v41, %v1784_v0 }
 0x471   : > { %v1807_v40 = vmul.f32 %v1796_v49, %v4180_v60  ;;  %v1808_v34 = vmul.f32 %v1800_v43, %v4181_v17  ;;  %2332 = vmatprep.subr.bf16.mxu1 %v2331_v24 }
 0x472   : > { %2330 = vmatpush1.bf16.msra.mxu0 %v2329_v52  ;;  %2334 = vmatpush1.bf16.msra.mxu1 %v2333_v4 }
 0x473   : > { %v2337_v42 = vpack.c.bf16 %v1807_v40, %v1805_v62  ;;  %v2335_v16 = vpack.c.bf16 %v1808_v34, %v1806_v2 }
 0x475   : > { %1886 = vmatmul.mubr.f32.vlgmr.msra.gmra.mrb[4].mxu0 %v4182_v59  ;;  %2336 = vmatprep.subr.bf16.mxu1 %v2335_v16 }
 0x476   : > { %2338 = vmatpush1.bf16.msra.mxu1 %v2337_v42 }
 0x479   : > { %2113 = vmatmul.mubr.msk.f32.vlgmr.msra.gmra.mrb[8].mxu1 %vm906_vm8, %v1544_v10 }
 0x47c   : > { %v1813_v28 = vpop.permute.xlu1 %1812 }
 0x548   : > { %v1887_v3 = vpop.f32.mrb[4].mxu0 }
 0x549   : > { %v1889_v23 = vpop.f32.mrb[5].mxu0  ;;  %v1888_v14 = vadd.f32 %v1887_v3, %v1813_v28 }
 0x54a   : > { %v1890_v33 = vadd.f32 %v1889_v23, %v1813_v28 }
 0x54c   : > { %v1958_v61 = vpop.f32.mrb[8].mxu1 }
 0x54d   : > { %v1959_v53 = vadd.f32 %v1958_v61, %v1888_v14  ;;  %v1960_v0 = vpop.f32.mrb[9].mxu1 }
 0x54e   : > { %v1961_v35 = vadd.f32 %v1960_v0, %v1890_v33 }
 0x54f   : > { %v2114_v29 = vmul.f32 -1.442695, %v1959_v53 }
 0x550   : > { %v2115_v13 = vmul.f32 -1.442695, %v1961_v35 }
 0x551   : > { %2391 = vpow2.f32 %v2114_v29 }
 0x552   : > { %2393 = vpow2.f32 %v2115_v13 }
 0x55b   : > { %v2392_v11 = vpop.eup %2391 }
 0x55c   : > { %v2394_v47 = vpop.eup %2393  ;;  %v1969_v19 = vadd.f32 1.0, %v2392_v11 }
 0x55d   : > { %v1970_v18 = vadd.f32 1.0, %v2394_v47 }
 0x55e   : > { %2395 = vrcp.f32 %v1969_v19 }
 0x55f   : > { %2397 = vrcp.f32 %v1970_v18 }
 0x568   : > { %v2396_v26 = vpop.eup %2395 }
 0x569   : > { %v2398_v54 = vpop.eup %2397 }
 0x56a   : > { %v1977_v55 = vcombine.low %v2396_v26, %v2398_v54 }
 0x56c   : > { %1979 = vst [vmem:[%s487_s18] sm:$0x77] %v1977_v55 }
 0x56d PF: > { %s23_s21 = sadd.s32 1, %s2432_s21  }
 0x56e   : > { %p20_p1 = scmp.ge.s32.totalorder %s23_s21, 4  }
 0x570   :  { %22 = sbr.rel (!%p20_p1) target bundleno = 1 (0x1), region = 120 }
 0x577   :  { %2001 = vsyncpa [#allocation3], 1 }
 0x578   :  { %2003 = vsyncpa [#allocation3 + $0x1], 1 }

</bundles_post_ra>
